<compile_context>
chip_gen: v7x
topology: tpu7x:2x2x1
jax: 0.10.0
libtpu: 0.0.40
codegen_flags: <defaults>
</compile_context>

<pallas_src>
import functools

import jax
import jax.numpy as jnp
from jax import lax
from jax.experimental import pallas as pl
from jax.experimental.pallas import tpu as pltpu

BN_EPS = 1e-5
LANE = 128                                # lane width / gate alignment
GRU_TC = 8                                # max timesteps per GRU grid step
VMEM_LIMIT = 32 * 1024 * 1024             # safe scoped-VMEM budget on v5e/v6e/v7x
FUSED_CONV_VMEM_BUDGET = 24 * 1024 * 1024 # whole-layer-resident conv kernel budget


def _round_up(x, m):
    return ((x + m - 1) // m) * m


# ----------------------------------------------------------------------------
# Pallas kernels
# ----------------------------------------------------------------------------
def conv_bn_relu_kernel(p_ref, w_ref, g_ref, b_ref, o_ref):
    """Fused conv layer: matmul + BatchNorm(batch stats) + ReLU, whole layer in VMEM.

    p_ref : (M, K)     bf16  im2col patch matrix (M = B*Hout*Wout, K = k*k*Cin)
    w_ref : (K, Cout)  bf16  conv weight, (kh, kw, cin) x cout
    g_ref : (1, Cout)  f32   BN gamma
    b_ref : (1, Cout)  f32   BN beta
    o_ref : (M, Cout)  bf16  normalized + ReLU'd activation (unpadded lanes)
    """
    y = jnp.dot(p_ref[...], w_ref[...], preferred_element_type=jnp.float32)
    # Exact training-mode batch statistics over all M = B*Hout*Wout positions
    # (two-pass mean / centered variance: no catastrophic cancellation).
    mean = jnp.mean(y, axis=0, keepdims=True)
    var = jnp.mean(jnp.square(y - mean), axis=0, keepdims=True)   # biased, like PyTorch BN
    scale = g_ref[...] * lax.rsqrt(var + BN_EPS)
    shift = b_ref[...] - mean * scale
    o_ref[...] = jnp.maximum(y * scale + shift, 0.0).astype(o_ref.dtype)


def gru_kernel(x_ref, wih_ref, bih_ref, whh_ref, bhh_ref, h_ref, *, hp, tc, t_total):
    """Fused single-layer GRU (input projection + recurrence); grid axis 0 = time blocks.

    x_ref   : (tc, B, Kin) bf16  time-major input block
    wih_ref : (Kin, 3*hp)  bf16  W_ih^T, gate g in lanes [g*hp, (g+1)*hp)  (hp % 128 == 0)
    bih_ref : (1, 3*hp)    f32
    whh_ref : (hp, 3*hp)   bf16  W_hh^T, same gate-separated layout
    bhh_ref : (1, 3*hp)    f32
    h_ref   : (B, hp)      f32   output ref, doubles as the VMEM-resident hidden carry
    Gate order follows PyTorch: [r, z, n].
    """
    blk = pl.program_id(0)

    @pl.when(blk == 0)
    def _():
        h_ref[...] = jnp.zeros_like(h_ref)            # h0 = 0 (PyTorch default)

    wih = wih_ref[...]
    bih = bih_ref[...]
    whh = whh_ref[...]
    bhh = bhh_ref[...]

    for j in range(tc):                               # fully unrolled inner time loop
        @pl.when(blk * tc + j < t_total)              # skip padded (ragged-tail) steps
        def _(j=j):
            h = h_ref[...]
            x_t = x_ref[j]                            # (B, Kin), contiguous time-major slab
            gx = jnp.dot(x_t, wih, preferred_element_type=jnp.float32) + bih
            gh = jnp.dot(h.astype(jnp.bfloat16), whh,
                         preferred_element_type=jnp.float32) + bhh
            r = jax.nn.sigmoid(gx[:, :hp] + gh[:, :hp])
            z = jax.nn.sigmoid(gx[:, hp:2 * hp] + gh[:, hp:2 * hp])
            n = jnp.tanh(gx[:, 2 * hp:] + r * gh[:, 2 * hp:])
            h_ref[...] = (1.0 - z) * n + z * h


# ----------------------------------------------------------------------------
# Wrappers
# ----------------------------------------------------------------------------
def im2col_nhwc(x, k, stride, pad):
    """x: (B, H, W, C) -> (B*Hout*Wout, k*k*C); column order = (kh, kw, c)."""
    B, H, W, C = x.shape
    xp = jnp.pad(x, ((0, 0), (pad, pad), (pad, pad), (0, 0)))
    Hout = (H - k + 2 * pad) // stride + 1
    Wout = (W - k + 2 * pad) // stride + 1
    cols = []
    for ki in range(k):
        for kj in range(k):
            cols.append(xp[:, ki:ki + stride * Hout:stride,
                           kj:kj + stride * Wout:stride, :])
    patches = jnp.stack(cols, axis=3)                 # (B, Hout, Wout, k*k, C)
    return patches.reshape(B * Hout * Wout, k * k * C), Hout, Wout


def conv_bn_relu_layer(x, w, gamma, beta, stride, pad):
    """x: (B, H, W, Cin) bf16 NHWC; w: PyTorch layout (Cout, Cin, k, k). Returns NHWC bf16."""
    B, H, W, Cin = x.shape
    Cout, _, k, _ = w.shape

    patches, Hout, Wout = im2col_nhwc(x, k, stride, pad)       # (M, K) bf16
    M, K = patches.shape

    # Whole-layer-resident fused kernel; rough layout-aware VMEM guard.
    approx_vmem = (M * _round_up(Cout, LANE) * 4 + M * _round_up(K, LANE) * 2)
    if approx_vmem > FUSED_CONV_VMEM_BUDGET:
        # TODO(synk): tiled two-pass fallback (HBM-resident y + partial stats) for big layers.
        raise NotImplementedError("conv layer too large for the fused whole-layer kernel")

    w_mat = w.transpose(2, 3, 1, 0).reshape(K, Cout).astype(jnp.bfloat16)
    g = gamma.reshape(1, Cout).astype(jnp.float32)
    b = beta.reshape(1, Cout).astype(jnp.float32)

    out = pl.pallas_call(
        conv_bn_relu_kernel,
        out_shape=jax.ShapeDtypeStruct((M, Cout), jnp.bfloat16),
        compiler_params=pltpu.CompilerParams(vmem_limit_bytes=VMEM_LIMIT),
    )(patches, w_mat, g, b)

    return out.reshape(B, Hout, Wout, Cout)


def gru_last_hidden(x_tm, wih_t, bih, whh_t, bhh, *, hp, tc, t_total):
    """x_tm: (Tp, B, Kin) bf16 time-major. Returns final hidden state (B, hp) f32."""
    Tp, B, Kin = x_tm.shape
    return pl.pallas_call(
        functools.partial(gru_kernel, hp=hp, tc=tc, t_total=t_total),
        out_shape=jax.ShapeDtypeStruct((B, hp), jnp.float32),
        grid=(Tp // tc,),
        in_specs=[pl.BlockSpec((tc, B, Kin), lambda t: (t, 0, 0)),
                  pl.BlockSpec((Kin, 3 * hp), lambda t: (0, 0)),
                  pl.BlockSpec((1, 3 * hp), lambda t: (0, 0)),
                  pl.BlockSpec((hp, 3 * hp), lambda t: (0, 0)),
                  pl.BlockSpec((1, 3 * hp), lambda t: (0, 0))],
        out_specs=pl.BlockSpec((B, hp), lambda t: (0, 0)),
        compiler_params=pltpu.CompilerParams(
            dimension_semantics=("arbitrary",),
            vmem_limit_bytes=VMEM_LIMIT),
    )(x_tm, wih_t, bih, whh_t, bhh)


# ----------------------------------------------------------------------------
# Forward pass
# ----------------------------------------------------------------------------
def reference_encoder_forward(speech, params, *, kernel_size, stride, gru_units):
    pad = (kernel_size - 1) // 2
    B, L, idim = speech.shape

    # Conv stack, NHWC end-to-end; one fused pallas_call per layer.
    x = speech[:, :, :, None].astype(jnp.bfloat16)              # (B, L, idim, 1)
    for (w, gamma, beta) in params["convs"]:
        x = conv_bn_relu_layer(x, w, gamma, beta, stride, pad)

    _, T, F, C = x.shape
    hs = x.reshape(B, T, F * C)                                  # (F, C)-major flatten
    Kin = F * C

    Hn = gru_units
    Hp = _round_up(Hn, LANE)

    w_ih, w_hh, b_ih, b_hh = params["gru"]
    # PyTorch flattens the conv output (C, F)-major; our NHWC flatten is (F, C)-major.
    # Permute W_ih columns so a real PyTorch checkpoint gives identical results.
    w_ih_p = w_ih.reshape(3 * Hn, C, F).transpose(0, 2, 1).reshape(3 * Hn, Kin)

    # Gate-separated, 128-lane-aligned weight layouts (padded gate lanes stay exactly 0).
    wih_t = jnp.pad(w_ih_p.reshape(3, Hn, Kin), ((0, 0), (0, Hp - Hn), (0, 0))
                    ).transpose(2, 0, 1).reshape(Kin, 3 * Hp).astype(jnp.bfloat16)
    whh_t = jnp.pad(w_hh.reshape(3, Hn, Hn), ((0, 0), (0, Hp - Hn), (0, Hp - Hn))
                    ).transpose(2, 0, 1).reshape(Hp, 3 * Hp).astype(jnp.bfloat16)
    bih = jnp.pad(b_ih.reshape(3, Hn), ((0, 0), (0, Hp - Hn))
                  ).reshape(1, 3 * Hp).astype(jnp.float32)
    bhh = jnp.pad(b_hh.reshape(3, Hn), ((0, 0), (0, Hp - Hn))
                  ).reshape(1, 3 * Hp).astype(jnp.float32)

    # Adaptive time blocking: no wasted recurrence steps at small T.
    Tc = min(GRU_TC, T)
    Tp = _round_up(T, Tc)
    x_tm = jnp.pad(hs.transpose(1, 0, 2),                        # time-major (Tp, B, Kin)
                   ((0, Tp - T), (0, 0), (0, 0))).astype(jnp.bfloat16)

    h_last = gru_last_hidden(x_tm, wih_t, bih, whh_t, bhh, hp=Hp, tc=Tc, t_total=T)
    return h_last[:, :Hn]


# ----------------------------------------------------------------------------
# Deterministic parameter init + demo
# ----------------------------------------------------------------------------
def init_params(key, idim, conv_chans_list, kernel_size, gru_units):
    params = {"convs": [], "gru": None}
    keys = jax.random.split(key, 2 * len(conv_chans_list) + 4)
    ki = 0
    in_ch = 1
    for out_ch in conv_chans_list:
        w = 0.1 * jax.random.normal(
            keys[ki], (out_ch, in_ch, kernel_size, kernel_size), jnp.float32)
        ki += 1
        gamma = 1.0 + 0.1 * jax.random.normal(keys[ki], (out_ch,), jnp.float32)
        ki += 1
        beta = jnp.zeros((out_ch,), jnp.float32)
        params["convs"].append((w, gamma, beta))
        in_ch = out_ch

    # GRU input feature size after the conv stack.
    f = idim
    pad = (kernel_size - 1) // 2
    for _ in conv_chans_list:
        f = (f - kernel_size + 2 * pad) // 2 + 1
    gru_in = f * conv_chans_list[-1]

    bound = 1.0 / (gru_units ** 0.5)
    w_ih = jax.random.uniform(keys[ki], (3 * gru_units, gru_in), jnp.float32, -bound, bound); ki += 1
    w_hh = jax.random.uniform(keys[ki], (3 * gru_units, gru_units), jnp.float32, -bound, bound); ki += 1
    b_ih = jax.random.uniform(keys[ki], (3 * gru_units,), jnp.float32, -bound, bound); ki += 1
    b_hh = jax.random.uniform(keys[ki], (3 * gru_units,), jnp.float32, -bound, bound); ki += 1
    params["gru"] = (w_ih, w_hh, b_ih, b_hh)
    return params


if __name__ == "__main__":
    # Small config consistent with the module: 3 conv layers, stride 2, kernel 3.
    B, L, IDIM = 2, 16, 16
    CONV_CHANS = (4, 4, 8)
    KERNEL, STRIDE = 3, 2
    GRU_UNITS = 32

    key = jax.random.PRNGKey(0)
    k_param, k_in = jax.random.split(key)
    params = init_params(k_param, IDIM, CONV_CHANS, KERNEL, GRU_UNITS)
    speech = jax.random.normal(k_in, (B, L, IDIM), jnp.float32)

    fwd = jax.jit(reference_encoder_forward,
                  static_argnames=("kernel_size", "stride", "gru_units"))
    ref_embs = fwd(speech, params,
                   kernel_size=KERNEL, stride=STRIDE, gru_units=GRU_UNITS)
    jax.block_until_ready(ref_embs)
    assert ref_embs.shape == (B, GRU_UNITS), ref_embs.shape
    assert bool(jnp.all(jnp.isfinite(ref_embs)))
    print("KERNEL_OK")
</pallas_src>

<mosaic_0001>
module attributes {stable_mosaic.version = 11 : i64} {
  func.func @conv_bn_relu_kernel(%arg0: memref<128x9xbf16, #tpu.memory_space<vmem>>, %arg1: memref<9x4xbf16, #tpu.memory_space<vmem>>, %arg2: memref<1x4xf32, #tpu.memory_space<vmem>>, %arg3: memref<1x4xf32, #tpu.memory_space<vmem>>, %arg4: memref<128x4xbf16, #tpu.memory_space<vmem>>) attributes {dimension_semantics = [], scalar_prefetch = 0 : i64, scratch_operands = 0 : i64, tpu.core_type = #tpu.core_type<tc>} {
    %c0 = arith.constant 0 : index
    %c0_0 = arith.constant 0 : index
    %0 = vector.load %arg0[%c0, %c0_0] : memref<128x9xbf16, #tpu.memory_space<vmem>>, vector<128x9xbf16>
    %c0_1 = arith.constant 0 : index
    %c0_2 = arith.constant 0 : index
    %1 = vector.load %arg1[%c0_1, %c0_2] : memref<9x4xbf16, #tpu.memory_space<vmem>>, vector<9x4xbf16>
    %cst = arith.constant dense<0.000000e+00> : vector<128x4xf32>
    %2 = tpu.matmul %0, %1, %cst {dimension_numbers = #tpu.dot_dimension_numbers<[1], [0], [0], [1], [0, 0, 1, 1], [], []>} : vector<128x9xbf16>, vector<9x4xbf16>, vector<128x4xf32> -> vector<128x4xf32>
    %cst_3 = arith.constant dense<0.000000e+00> : vector<4xf32>
    %3 = vector.multi_reduction <add>, %2, %cst_3 [0] : vector<128x4xf32> to vector<4xf32>
    %4 = vector.shape_cast %3 : vector<4xf32> to vector<1x4xf32>
    %cst_4 = arith.constant 1.280000e+02 : f32
    %5 = vector.broadcast %cst_4 : f32 to vector<1x4xf32>
    %6 = arith.divf %4, %5 : vector<1x4xf32>
    %7 = vector.broadcast %6 : vector<1x4xf32> to vector<128x4xf32>
    %8 = arith.subf %2, %7 : vector<128x4xf32>
    %9 = arith.mulf %8, %8 : vector<128x4xf32>
    %cst_5 = arith.constant dense<0.000000e+00> : vector<4xf32>
    %10 = vector.multi_reduction <add>, %9, %cst_5 [0] : vector<128x4xf32> to vector<4xf32>
    %11 = vector.shape_cast %10 : vector<4xf32> to vector<1x4xf32>
    %cst_6 = arith.constant 1.280000e+02 : f32
    %12 = vector.broadcast %cst_6 : f32 to vector<1x4xf32>
    %13 = arith.divf %11, %12 : vector<1x4xf32>
    %c0_7 = arith.constant 0 : index
    %c0_8 = arith.constant 0 : index
    %14 = vector.load %arg2[%c0_7, %c0_8] : memref<1x4xf32, #tpu.memory_space<vmem>>, vector<1x4xf32>
    %cst_9 = arith.constant 9.99999974E-6 : f32
    %15 = vector.broadcast %cst_9 : f32 to vector<1x4xf32>
    %16 = arith.addf %13, %15 : vector<1x4xf32>
    %17 = math.rsqrt %16 : vector<1x4xf32>
    %18 = arith.mulf %14, %17 : vector<1x4xf32>
    %c0_10 = arith.constant 0 : index
    %c0_11 = arith.constant 0 : index
    %19 = vector.load %arg3[%c0_10, %c0_11] : memref<1x4xf32, #tpu.memory_space<vmem>>, vector<1x4xf32>
    %20 = arith.mulf %6, %18 : vector<1x4xf32>
    %21 = arith.subf %19, %20 : vector<1x4xf32>
    %22 = vector.broadcast %18 : vector<1x4xf32> to vector<128x4xf32>
    %23 = arith.mulf %2, %22 : vector<128x4xf32>
    %24 = vector.broadcast %21 : vector<1x4xf32> to vector<128x4xf32>
    %25 = arith.addf %23, %24 : vector<128x4xf32>
    %cst_12 = arith.constant 0.000000e+00 : f32
    %26 = vector.broadcast %cst_12 : f32 to vector<128x4xf32>
    %27 = arith.maximumf %25, %26 : vector<128x4xf32>
    %28 = arith.truncf %27 : vector<128x4xf32> to vector<128x4xbf16>
    %c0_13 = arith.constant 0 : index
    %c0_14 = arith.constant 0 : index
    %29 = vector.load %arg4[%c0_13, %c0_14] : memref<128x4xbf16, #tpu.memory_space<vmem>>, vector<128x4xbf16>
    tpu.vector_store %arg4[%c0_13, %c0_14], %28 {strides = array<i32>} : memref<128x4xbf16, #tpu.memory_space<vmem>>, vector<128x4xbf16>,
    return
  }
}

module attributes {stable_mosaic.version = 11 : i64} {
  func.func @conv_bn_relu_kernel(%arg0: memref<32x36xbf16, #tpu.memory_space<vmem>>, %arg1: memref<36x4xbf16, #tpu.memory_space<vmem>>, %arg2: memref<1x4xf32, #tpu.memory_space<vmem>>, %arg3: memref<1x4xf32, #tpu.memory_space<vmem>>, %arg4: memref<32x4xbf16, #tpu.memory_space<vmem>>) attributes {dimension_semantics = [], scalar_prefetch = 0 : i64, scratch_operands = 0 : i64, tpu.core_type = #tpu.core_type<tc>} {
    %c0 = arith.constant 0 : index
    %c0_0 = arith.constant 0 : index
    %0 = vector.load %arg0[%c0, %c0_0] : memref<32x36xbf16, #tpu.memory_space<vmem>>, vector<32x36xbf16>
    %c0_1 = arith.constant 0 : index
    %c0_2 = arith.constant 0 : index
    %1 = vector.load %arg1[%c0_1, %c0_2] : memref<36x4xbf16, #tpu.memory_space<vmem>>, vector<36x4xbf16>
    %cst = arith.constant dense<0.000000e+00> : vector<32x4xf32>
    %2 = tpu.matmul %0, %1, %cst {dimension_numbers = #tpu.dot_dimension_numbers<[1], [0], [0], [1], [0, 0, 1, 1], [], []>} : vector<32x36xbf16>, vector<36x4xbf16>, vector<32x4xf32> -> vector<32x4xf32>
    %cst_3 = arith.constant dense<0.000000e+00> : vector<4xf32>
    %3 = vector.multi_reduction <add>, %2, %cst_3 [0] : vector<32x4xf32> to vector<4xf32>
    %4 = vector.shape_cast %3 : vector<4xf32> to vector<1x4xf32>
    %cst_4 = arith.constant 3.200000e+01 : f32
    %5 = vector.broadcast %cst_4 : f32 to vector<1x4xf32>
    %6 = arith.divf %4, %5 : vector<1x4xf32>
    %7 = vector.broadcast %6 : vector<1x4xf32> to vector<32x4xf32>
    %8 = arith.subf %2, %7 : vector<32x4xf32>
    %9 = arith.mulf %8, %8 : vector<32x4xf32>
    %cst_5 = arith.constant dense<0.000000e+00> : vector<4xf32>
    %10 = vector.multi_reduction <add>, %9, %cst_5 [0] : vector<32x4xf32> to vector<4xf32>
    %11 = vector.shape_cast %10 : vector<4xf32> to vector<1x4xf32>
    %cst_6 = arith.constant 3.200000e+01 : f32
    %12 = vector.broadcast %cst_6 : f32 to vector<1x4xf32>
    %13 = arith.divf %11, %12 : vector<1x4xf32>
    %c0_7 = arith.constant 0 : index
    %c0_8 = arith.constant 0 : index
    %14 = vector.load %arg2[%c0_7, %c0_8] : memref<1x4xf32, #tpu.memory_space<vmem>>, vector<1x4xf32>
    %cst_9 = arith.constant 9.99999974E-6 : f32
    %15 = vector.broadcast %cst_9 : f32 to vector<1x4xf32>
    %16 = arith.addf %13, %15 : vector<1x4xf32>
    %17 = math.rsqrt %16 : vector<1x4xf32>
    %18 = arith.mulf %14, %17 : vector<1x4xf32>
    %c0_10 = arith.constant 0 : index
    %c0_11 = arith.constant 0 : index
    %19 = vector.load %arg3[%c0_10, %c0_11] : memref<1x4xf32, #tpu.memory_space<vmem>>, vector<1x4xf32>
    %20 = arith.mulf %6, %18 : vector<1x4xf32>
    %21 = arith.subf %19, %20 : vector<1x4xf32>
    %22 = vector.broadcast %18 : vector<1x4xf32> to vector<32x4xf32>
    %23 = arith.mulf %2, %22 : vector<32x4xf32>
    %24 = vector.broadcast %21 : vector<1x4xf32> to vector<32x4xf32>
    %25 = arith.addf %23, %24 : vector<32x4xf32>
    %cst_12 = arith.constant 0.000000e+00 : f32
    %26 = vector.broadcast %cst_12 : f32 to vector<32x4xf32>
    %27 = arith.maximumf %25, %26 : vector<32x4xf32>
    %28 = arith.truncf %27 : vector<32x4xf32> to vector<32x4xbf16>
    %c0_13 = arith.constant 0 : index
    %c0_14 = arith.constant 0 : index
    %29 = vector.load %arg4[%c0_13, %c0_14] : memref<32x4xbf16, #tpu.memory_space<vmem>>, vector<32x4xbf16>
    tpu.vector_store %arg4[%c0_13, %c0_14], %28 {strides = array<i32>} : memref<32x4xbf16, #tpu.memory_space<vmem>>, vector<32x4xbf16>,
    return
  }
}

module attributes {stable_mosaic.version = 11 : i64} {
  func.func @conv_bn_relu_kernel(%arg0: memref<8x36xbf16, #tpu.memory_space<vmem>>, %arg1: memref<36x8xbf16, #tpu.memory_space<vmem>>, %arg2: memref<1x8xf32, #tpu.memory_space<vmem>>, %arg3: memref<1x8xf32, #tpu.memory_space<vmem>>, %arg4: memref<8x8xbf16, #tpu.memory_space<vmem>>) attributes {dimension_semantics = [], scalar_prefetch = 0 : i64, scratch_operands = 0 : i64, tpu.core_type = #tpu.core_type<tc>} {
    %c0 = arith.constant 0 : index
    %c0_0 = arith.constant 0 : index
    %0 = vector.load %arg0[%c0, %c0_0] : memref<8x36xbf16, #tpu.memory_space<vmem>>, vector<8x36xbf16>
    %c0_1 = arith.constant 0 : index
    %c0_2 = arith.constant 0 : index
    %1 = vector.load %arg1[%c0_1, %c0_2] : memref<36x8xbf16, #tpu.memory_space<vmem>>, vector<36x8xbf16>
    %cst = arith.constant dense<0.000000e+00> : vector<8x8xf32>
    %2 = tpu.matmul %0, %1, %cst {dimension_numbers = #tpu.dot_dimension_numbers<[1], [0], [0], [1], [0, 0, 1, 1], [], []>} : vector<8x36xbf16>, vector<36x8xbf16>, vector<8x8xf32> -> vector<8x8xf32>
    %cst_3 = arith.constant dense<0.000000e+00> : vector<8xf32>
    %3 = vector.multi_reduction <add>, %2, %cst_3 [0] : vector<8x8xf32> to vector<8xf32>
    %4 = vector.shape_cast %3 : vector<8xf32> to vector<1x8xf32>
    %cst_4 = arith.constant 8.000000e+00 : f32
    %5 = vector.broadcast %cst_4 : f32 to vector<1x8xf32>
    %6 = arith.divf %4, %5 : vector<1x8xf32>
    %7 = vector.broadcast %6 : vector<1x8xf32> to vector<8x8xf32>
    %8 = arith.subf %2, %7 : vector<8x8xf32>
    %9 = arith.mulf %8, %8 : vector<8x8xf32>
    %cst_5 = arith.constant dense<0.000000e+00> : vector<8xf32>
    %10 = vector.multi_reduction <add>, %9, %cst_5 [0] : vector<8x8xf32> to vector<8xf32>
    %11 = vector.shape_cast %10 : vector<8xf32> to vector<1x8xf32>
    %cst_6 = arith.constant 8.000000e+00 : f32
    %12 = vector.broadcast %cst_6 : f32 to vector<1x8xf32>
    %13 = arith.divf %11, %12 : vector<1x8xf32>
    %c0_7 = arith.constant 0 : index
    %c0_8 = arith.constant 0 : index
    %14 = vector.load %arg2[%c0_7, %c0_8] : memref<1x8xf32, #tpu.memory_space<vmem>>, vector<1x8xf32>
    %cst_9 = arith.constant 9.99999974E-6 : f32
    %15 = vector.broadcast %cst_9 : f32 to vector<1x8xf32>
    %16 = arith.addf %13, %15 : vector<1x8xf32>
    %17 = math.rsqrt %16 : vector<1x8xf32>
    %18 = arith.mulf %14, %17 : vector<1x8xf32>
    %c0_10 = arith.constant 0 : index
    %c0_11 = arith.constant 0 : index
    %19 = vector.load %arg3[%c0_10, %c0_11] : memref<1x8xf32, #tpu.memory_space<vmem>>, vector<1x8xf32>
    %20 = arith.mulf %6, %18 : vector<1x8xf32>
    %21 = arith.subf %19, %20 : vector<1x8xf32>
    %22 = vector.broadcast %18 : vector<1x8xf32> to vector<8x8xf32>
    %23 = arith.mulf %2, %22 : vector<8x8xf32>
    %24 = vector.broadcast %21 : vector<1x8xf32> to vector<8x8xf32>
    %25 = arith.addf %23, %24 : vector<8x8xf32>
    %cst_12 = arith.constant 0.000000e+00 : f32
    %26 = vector.broadcast %cst_12 : f32 to vector<8x8xf32>
    %27 = arith.maximumf %25, %26 : vector<8x8xf32>
    %28 = arith.truncf %27 : vector<8x8xf32> to vector<8x8xbf16>
    %c0_13 = arith.constant 0 : index
    %c0_14 = arith.constant 0 : index
    %29 = vector.load %arg4[%c0_13, %c0_14] : memref<8x8xbf16, #tpu.memory_space<vmem>>, vector<8x8xbf16>
    tpu.vector_store %arg4[%c0_13, %c0_14], %28 {strides = array<i32>} : memref<8x8xbf16, #tpu.memory_space<vmem>>, vector<8x8xbf16>,
    return
  }
}

module attributes {stable_mosaic.version = 11 : i64} {
  func.func @gru_kernel(%arg0: i32, %arg1: memref<2x2x16xbf16, #tpu.memory_space<vmem>>, %arg2: memref<16x384xbf16, #tpu.memory_space<vmem>>, %arg3: memref<1x384xf32, #tpu.memory_space<vmem>>, %arg4: memref<128x384xbf16, #tpu.memory_space<vmem>>, %arg5: memref<1x384xf32, #tpu.memory_space<vmem>>, %arg6: memref<2x128xf32, #tpu.memory_space<vmem>>) attributes {dimension_semantics = [#tpu.dimension_semantics<arbitrary>], iteration_bounds = array<i64: 1>, scalar_prefetch = 0 : i64, scratch_operands = 0 : i64, tpu.core_type = #tpu.core_type<tc>, window_params = [{transform_indices = @transform_0, window_bounds = array<i64: 2, 2, 16>}, {pipeline_mode = #tpu.pipeline_mode<synchronous>, transform_indices = @transform_1, window_bounds = array<i64: 16, 384>}, {pipeline_mode = #tpu.pipeline_mode<synchronous>, transform_indices = @transform_2, window_bounds = array<i64: 1, 384>}, {pipeline_mode = #tpu.pipeline_mode<synchronous>, transform_indices = @transform_3, window_bounds = array<i64: 128, 384>}, {pipeline_mode = #tpu.pipeline_mode<synchronous>, transform_indices = @transform_4, window_bounds = array<i64: 1, 384>}, {pipeline_mode = #tpu.pipeline_mode<synchronous>, transform_indices = @transform_5, window_bounds = array<i64: 2, 128>}]} {
    %c0_i32 = arith.constant 0 : i32
    %0 = arith.cmpi eq, %arg0, %c0_i32 : i32
    %1 = arith.extui %0 : i1 to i32
    %c0_i32_0 = arith.constant 0 : i32
    %2 = arith.cmpi ne, %1, %c0_i32_0 : i32
    scf.if %2 {
      %cst = arith.constant 0.000000e+00 : f32
      %17 = vector.broadcast %cst : f32 to vector<2x128xf32>
      %c0_14 = arith.constant 0 : index
      %c0_15 = arith.constant 0 : index
      %18 = vector.load %arg6[%c0_14, %c0_15] : memref<2x128xf32, #tpu.memory_space<vmem>>, vector<2x128xf32>
      tpu.vector_store %arg6[%c0_14, %c0_15], %17 {strides = array<i32>} : memref<2x128xf32, #tpu.memory_space<vmem>>, vector<2x128xf32>,
    } else {
    }
    %c0 = arith.constant 0 : index
    %c0_1 = arith.constant 0 : index
    %3 = vector.load %arg2[%c0, %c0_1] : memref<16x384xbf16, #tpu.memory_space<vmem>>, vector<16x384xbf16>
    %c0_2 = arith.constant 0 : index
    %c0_3 = arith.constant 0 : index
    %4 = vector.load %arg3[%c0_2, %c0_3] : memref<1x384xf32, #tpu.memory_space<vmem>>, vector<1x384xf32>
    %c0_4 = arith.constant 0 : index
    %c0_5 = arith.constant 0 : index
    %5 = vector.load %arg4[%c0_4, %c0_5] : memref<128x384xbf16, #tpu.memory_space<vmem>>, vector<128x384xbf16>
    %c0_6 = arith.constant 0 : index
    %c0_7 = arith.constant 0 : index
    %6 = vector.load %arg5[%c0_6, %c0_7] : memref<1x384xf32, #tpu.memory_space<vmem>>, vector<1x384xf32>
    %c2_i32 = arith.constant 2 : i32
    %7 = arith.muli %arg0, %c2_i32 : i32
    %c0_i32_8 = arith.constant 0 : i32
    %8 = arith.addi %7, %c0_i32_8 : i32
    %c2_i32_9 = arith.constant 2 : i32
    %9 = arith.cmpi slt, %8, %c2_i32_9 : i32
    %10 = arith.extui %9 : i1 to i32
    %c0_i32_10 = arith.constant 0 : i32
    %11 = arith.cmpi ne, %10, %c0_i32_10 : i32
    scf.if %11 {
      %c0_14 = arith.constant 0 : index
      %c0_15 = arith.constant 0 : index
      %17 = vector.load %arg6[%c0_14, %c0_15] : memref<2x128xf32, #tpu.memory_space<vmem>>, vector<2x128xf32>
      %c0_16 = arith.constant 0 : index
      %c0_17 = arith.constant 0 : index
      %c0_18 = arith.constant 0 : index
      %18 = vector.load %arg1[%c0_16, %c0_17, %c0_18] : memref<2x2x16xbf16, #tpu.memory_space<vmem>>, vector<1x2x16xbf16>
      %19 = vector.shape_cast %18 : vector<1x2x16xbf16> to vector<2x16xbf16>
      %cst = arith.constant dense<0.000000e+00> : vector<2x384xf32>
      %20 = tpu.matmul %19, %3, %cst {dimension_numbers = #tpu.dot_dimension_numbers<[1], [0], [0], [1], [0, 0, 1, 1], [], []>} : vector<2x16xbf16>, vector<16x384xbf16>, vector<2x384xf32> -> vector<2x384xf32>
      %21 = vector.broadcast %4 : vector<1x384xf32> to vector<2x384xf32>
      %22 = arith.addf %20, %21 : vector<2x384xf32>
      %23 = arith.truncf %17 : vector<2x128xf32> to vector<2x128xbf16>
      %cst_19 = arith.constant dense<0.000000e+00> : vector<2x384xf32>
      %24 = tpu.matmul %23, %5, %cst_19 {dimension_numbers = #tpu.dot_dimension_numbers<[1], [0], [0], [1], [0, 0, 1, 1], [], []>} : vector<2x128xbf16>, vector<128x384xbf16>, vector<2x384xf32> -> vector<2x384xf32>
      %25 = vector.broadcast %6 : vector<1x384xf32> to vector<2x384xf32>
      %26 = arith.addf %24, %25 : vector<2x384xf32>
      %27 = vector.extract_strided_slice %22 {offsets = [0, 0], sizes = [2, 128], strides = [1, 1]} : vector<2x384xf32> to vector<2x128xf32>
      %28 = vector.extract_strided_slice %26 {offsets = [0, 0], sizes = [2, 128], strides = [1, 1]} : vector<2x384xf32> to vector<2x128xf32>
      %29 = arith.addf %27, %28 : vector<2x128xf32>
      %30 = arith.negf %29 : vector<2x128xf32>
      %31 = math.exp %30 : vector<2x128xf32>
      %cst_20 = arith.constant 1.000000e+00 : f32
      %32 = vector.broadcast %cst_20 : f32 to vector<2x128xf32>
      %33 = arith.addf %32, %31 : vector<2x128xf32>
      %34 = arith.divf %32, %33 : vector<2x128xf32>
      %35 = vector.extract_strided_slice %22 {offsets = [0, 128], sizes = [2, 128], strides = [1, 1]} : vector<2x384xf32> to vector<2x128xf32>
      %36 = vector.extract_strided_slice %26 {offsets = [0, 128], sizes = [2, 128], strides = [1, 1]} : vector<2x384xf32> to vector<2x128xf32>
      %37 = arith.addf %35, %36 : vector<2x128xf32>
      %38 = arith.negf %37 : vector<2x128xf32>
      %39 = math.exp %38 : vector<2x128xf32>
      %cst_21 = arith.constant 1.000000e+00 : f32
      %40 = vector.broadcast %cst_21 : f32 to vector<2x128xf32>
      %41 = arith.addf %40, %39 : vector<2x128xf32>
      %42 = arith.divf %40, %41 : vector<2x128xf32>
      %43 = vector.extract_strided_slice %22 {offsets = [0, 256], sizes = [2, 128], strides = [1, 1]} : vector<2x384xf32> to vector<2x128xf32>
      %44 = vector.extract_strided_slice %26 {offsets = [0, 256], sizes = [2, 128], strides = [1, 1]} : vector<2x384xf32> to vector<2x128xf32>
      %45 = arith.mulf %34, %44 : vector<2x128xf32>
      %46 = arith.addf %43, %45 : vector<2x128xf32>
      %47 = math.tanh %46 : vector<2x128xf32>
      %cst_22 = arith.constant 1.000000e+00 : f32
      %48 = vector.broadcast %cst_22 : f32 to vector<2x128xf32>
      %49 = arith.subf %48, %42 : vector<2x128xf32>
      %50 = arith.mulf %49, %47 : vector<2x128xf32>
      %51 = arith.mulf %42, %17 : vector<2x128xf32>
      %52 = arith.addf %50, %51 : vector<2x128xf32>
      %c0_23 = arith.constant 0 : index
      %c0_24 = arith.constant 0 : index
      %53 = vector.load %arg6[%c0_23, %c0_24] : memref<2x128xf32, #tpu.memory_space<vmem>>, vector<2x128xf32>
      tpu.vector_store %arg6[%c0_23, %c0_24], %52 {strides = array<i32>} : memref<2x128xf32, #tpu.memory_space<vmem>>, vector<2x128xf32>,
    } else {
    }
    %c2_i32_11 = arith.constant 2 : i32
    %12 = arith.muli %arg0, %c2_i32_11 : i32
    %c1_i32 = arith.constant 1 : i32
    %13 = arith.addi %12, %c1_i32 : i32
    %c2_i32_12 = arith.constant 2 : i32
    %14 = arith.cmpi slt, %13, %c2_i32_12 : i32
    %15 = arith.extui %14 : i1 to i32
    %c0_i32_13 = arith.constant 0 : i32
    %16 = arith.cmpi ne, %15, %c0_i32_13 : i32
    scf.if %16 {
      %c0_14 = arith.constant 0 : index
      %c0_15 = arith.constant 0 : index
      %17 = vector.load %arg6[%c0_14, %c0_15] : memref<2x128xf32, #tpu.memory_space<vmem>>, vector<2x128xf32>
      %c1 = arith.constant 1 : index
      %c0_16 = arith.constant 0 : index
      %c0_17 = arith.constant 0 : index
      %18 = vector.load %arg1[%c1, %c0_16, %c0_17] : memref<2x2x16xbf16, #tpu.memory_space<vmem>>, vector<1x2x16xbf16>
      %19 = vector.shape_cast %18 : vector<1x2x16xbf16> to vector<2x16xbf16>
      %cst = arith.constant dense<0.000000e+00> : vector<2x384xf32>
      %20 = tpu.matmul %19, %3, %cst {dimension_numbers = #tpu.dot_dimension_numbers<[1], [0], [0], [1], [0, 0, 1, 1], [], []>} : vector<2x16xbf16>, vector<16x384xbf16>, vector<2x384xf32> -> vector<2x384xf32>
      %21 = vector.broadcast %4 : vector<1x384xf32> to vector<2x384xf32>
      %22 = arith.addf %20, %21 : vector<2x384xf32>
      %23 = arith.truncf %17 : vector<2x128xf32> to vector<2x128xbf16>
      %cst_18 = arith.constant dense<0.000000e+00> : vector<2x384xf32>
      %24 = tpu.matmul %23, %5, %cst_18 {dimension_numbers = #tpu.dot_dimension_numbers<[1], [0], [0], [1], [0, 0, 1, 1], [], []>} : vector<2x128xbf16>, vector<128x384xbf16>, vector<2x384xf32> -> vector<2x384xf32>
      %25 = vector.broadcast %6 : vector<1x384xf32> to vector<2x384xf32>
      %26 = arith.addf %24, %25 : vector<2x384xf32>
      %27 = vector.extract_strided_slice %22 {offsets = [0, 0], sizes = [2, 128], strides = [1, 1]} : vector<2x384xf32> to vector<2x128xf32>
      %28 = vector.extract_strided_slice %26 {offsets = [0, 0], sizes = [2, 128], strides = [1, 1]} : vector<2x384xf32> to vector<2x128xf32>
      %29 = arith.addf %27, %28 : vector<2x128xf32>
      %30 = arith.negf %29 : vector<2x128xf32>
      %31 = math.exp %30 : vector<2x128xf32>
      %cst_19 = arith.constant 1.000000e+00 : f32
      %32 = vector.broadcast %cst_19 : f32 to vector<2x128xf32>
      %33 = arith.addf %32, %31 : vector<2x128xf32>
      %34 = arith.divf %32, %33 : vector<2x128xf32>
      %35 = vector.extract_strided_slice %22 {offsets = [0, 128], sizes = [2, 128], strides = [1, 1]} : vector<2x384xf32> to vector<2x128xf32>
      %36 = vector.extract_strided_slice %26 {offsets = [0, 128], sizes = [2, 128], strides = [1, 1]} : vector<2x384xf32> to vector<2x128xf32>
      %37 = arith.addf %35, %36 : vector<2x128xf32>
      %38 = arith.negf %37 : vector<2x128xf32>
      %39 = math.exp %38 : vector<2x128xf32>
      %cst_20 = arith.constant 1.000000e+00 : f32
      %40 = vector.broadcast %cst_20 : f32 to vector<2x128xf32>
      %41 = arith.addf %40, %39 : vector<2x128xf32>
      %42 = arith.divf %40, %41 : vector<2x128xf32>
      %43 = vector.extract_strided_slice %22 {offsets = [0, 256], sizes = [2, 128], strides = [1, 1]} : vector<2x384xf32> to vector<2x128xf32>
      %44 = vector.extract_strided_slice %26 {offsets = [0, 256], sizes = [2, 128], strides = [1, 1]} : vector<2x384xf32> to vector<2x128xf32>
      %45 = arith.mulf %34, %44 : vector<2x128xf32>
      %46 = arith.addf %43, %45 : vector<2x128xf32>
      %47 = math.tanh %46 : vector<2x128xf32>
      %cst_21 = arith.constant 1.000000e+00 : f32
      %48 = vector.broadcast %cst_21 : f32 to vector<2x128xf32>
      %49 = arith.subf %48, %42 : vector<2x128xf32>
      %50 = arith.mulf %49, %47 : vector<2x128xf32>
      %51 = arith.mulf %42, %17 : vector<2x128xf32>
      %52 = arith.addf %50, %51 : vector<2x128xf32>
      %c0_22 = arith.constant 0 : index
      %c0_23 = arith.constant 0 : index
      %53 = vector.load %arg6[%c0_22, %c0_23] : memref<2x128xf32, #tpu.memory_space<vmem>>, vector<2x128xf32>
      tpu.vector_store %arg6[%c0_22, %c0_23], %52 {strides = array<i32>} : memref<2x128xf32, #tpu.memory_space<vmem>>, vector<2x128xf32>,
    } else {
    }
    return
  }
  func.func @transform_0(%arg0: i32) -> (i32, i32, i32) {
    %c0_i32 = arith.constant 0 : i32
    %c0_i32_0 = arith.constant 0 : i32
    %c0_i32_1 = arith.constant 0 : i32
    return %arg0, %c0_i32, %c0_i32_0 : i32, i32, i32
  }
  func.func @transform_1(%arg0: i32) -> (i32, i32) {
    %c0_i32 = arith.constant 0 : i32
    %c0_i32_0 = arith.constant 0 : i32
    %c0_i32_1 = arith.constant 0 : i32
    return %c0_i32, %c0_i32_0 : i32, i32
  }
  func.func @transform_2(%arg0: i32) -> (i32, i32) {
    %c0_i32 = arith.constant 0 : i32
    %c0_i32_0 = arith.constant 0 : i32
    %c0_i32_1 = arith.constant 0 : i32
    return %c0_i32, %c0_i32_0 : i32, i32
  }
  func.func @transform_3(%arg0: i32) -> (i32, i32) {
    %c0_i32 = arith.constant 0 : i32
    %c0_i32_0 = arith.constant 0 : i32
    %c0_i32_1 = arith.constant 0 : i32
    return %c0_i32, %c0_i32_0 : i32, i32
  }
  func.func @transform_4(%arg0: i32) -> (i32, i32) {
    %c0_i32 = arith.constant 0 : i32
    %c0_i32_0 = arith.constant 0 : i32
    %c0_i32_1 = arith.constant 0 : i32
    return %c0_i32, %c0_i32_0 : i32, i32
  }
  func.func @transform_5(%arg0: i32) -> (i32, i32) {
    %c0_i32 = arith.constant 0 : i32
    %c0_i32_0 = arith.constant 0 : i32
    %c0_i32_1 = arith.constant 0 : i32
    return %c0_i32, %c0_i32_0 : i32, i32
  }
}

</mosaic_0001>

<bundles_post_ra>
// kernel: reference_encoder_forward.4
= control target key start
LH: loop header
LB: loop body
LE: loop exit
PB: predicated region body
PF: predicated region fallthrough
CT: control target
= control target key end

     0   :  { %vm106_vm0 = vcmask 1043456   ;;  %vm107_vm1 = vcmask 1044480   ;;  %vm81_vm2 = vcmask 72704   ;;  %v562_v1 = vmov 65535   ;;  %s824_s1 = inlined_call_operand.vmem [shape: bf16[9,4], index: 1, kind: input, shape index: {}]   ;;  %s825_s0 = inlined_call_operand.vmem [shape: bf16[128,9], index: 0, kind: input, shape index: {}]   ;;  %s826_s2 = inlined_call_operand.vmem [shape: f32[1,4], index: 2, kind: input, shape index: {}]   ;;  %s827_s3 = inlined_call_operand.vmem [shape: f32[1,4], index: 3, kind: input, shape index: {}]   ;;  %s828_s4 = inlined_call_operand.vmem [shape: bf16[128,4], index: 4, kind: output, shape index: {}]  }
   0x1   :  { %v551_v0 = vld [vmem:[%s824_s1] sm:$0x1f]   ;;  %v108_v2 = vsel %vm106_vm0, 4294967295, %v562_v1  ;;  %v553_v6 = vld [vmem:[%s825_s0 + $0x8] sm:$0xff]   ;;  %v554_v7 = vld [vmem:[%s825_s0 + $0x10] sm:$0xff]   ;;  %vm210_vm3 = vcmask 31744  }
   0x2   :  { %v552_v3 = vld [vmem:[%s825_s0] sm:$0xff]   ;;  %v109_v4 = vsel %vm107_vm1, %v108_v2, 0  ;;  %v557_v9 = vld [vmem:[%s825_s0 + $0x28] sm:$0xff]   ;;  %v558_v10 = vld [vmem:[%s825_s0 + $0x30] sm:$0xff]   ;;  %vm451_vm4 = vcmask 27648  }
   0x3   :  { %v111_v5 = vand.u32 %v551_v0, %v109_v4  ;;  %532 = vmatprep.mubr.msk.bf16.mxu0 %vm81_vm2, %v552_v3  ;;  %v556_v8 = vld [vmem:[%s825_s0 + $0x20] sm:$0xff]   ;;  %v555_v11 = vld [vmem:[%s825_s0 + $0x18] sm:$0xff]  }
   0x4   :  { %540 = vmatprep.mubr.msk.bf16.mxu1 %vm81_vm2, %v556_v8  ;;  %v559_v12 = vld [vmem:[%s825_s0 + $0x38] sm:$0xff]  }
   0x5   :  { %530 = vmatprep.subr.bf16.mxu0 %v111_v5  ;;  %548 = vmatprep.subr.bf16.mxu1 %v111_v5 }
   0x6   :  { %531 = vmatpush3.bf16.msra.mxu0 %v111_v5  ;;  %549 = vmatpush3.bf16.msra.mxu1 %v111_v5 }
   0x9   :  { %533 = vmatmul.mubr.msk.bf16.vlgmr.msra.gmra.mrb[0].mxu0 %vm81_vm2, %v553_v6  ;;  %541 = vmatmul.mubr.msk.bf16.vlgmr.msra.gmra.mrb[0].mxu1 %vm81_vm2, %v557_v9 }
   0xa   :  { %536 = vmatprep.mubr.msk.bf16.mxu0 %vm81_vm2, %v554_v7  ;;  %544 = vmatprep.mubr.msk.bf16.mxu1 %vm81_vm2, %v558_v10 }
  0x11   :  { %537 = vmatmul.mubr.msk.bf16.gmra.mrb[4].mxu0 %vm81_vm2, %v555_v11  ;;  %545 = vmatmul.mubr.msk.bf16.gmra.mrb[4].mxu1 %vm81_vm2, %v559_v12 }
  0xdc   :  { %v623_v13 = vpop.f32.mrb[0].mxu0  ;;  %v625_v14 = vpop.f32.mrb[0].mxu1 }
  0xdd   :  { %v627_v15 = vpop.f32.mrb[1].mxu0  ;;  %v629_v16 = vpop.f32.mrb[1].mxu1  ;;  %v214_v24 = vsel %vm210_vm3, %v623_v13, 0.0  ;;  %v230_v48 = vsel %vm210_vm3, %v625_v14, 0.0 }
  0xde   :  { %v631_v17 = vpop.f32.mrb[2].mxu0  ;;  %v633_v18 = vpop.f32.mrb[2].mxu1  ;;  %v211_v21 = vsel %vm210_vm3, %v627_v15, 0.0  ;;  %v226_v43 = vsel %vm210_vm3, %v629_v16, 0.0 }
  0xdf   :  { %v635_v19 = vpop.f32.mrb[3].mxu0  ;;  %v637_v20 = vpop.f32.mrb[3].mxu1  ;;  %v216_v26 = vsel %vm210_vm3, %v631_v17, 0.0  ;;  %v232_v50 = vsel %vm210_vm3, %v633_v18, 0.0 }
  0xe0   :  { %v212_v22 = vsel %vm210_vm3, %v635_v19, 0.0  ;;  %v228_v46 = vsel %vm210_vm3, %v637_v20, 0.0 }
  0xe1   :  { %v213_v23 = vadd.f32 %v212_v22, %v211_v21 }
  0xe3   :  { %v215_v25 = vadd.f32 %v214_v24, %v213_v23 }
  0xe4   :  { %v647_v27 = vpop.f32.mrb[4].mxu0  ;;  %v649_v28 = vpop.f32.mrb[4].mxu1 }
  0xe5   :  { %v651_v29 = vpop.f32.mrb[5].mxu0  ;;  %v217_v30 = vadd.f32 %v216_v26, %v215_v25  ;;  %v653_v31 = vpop.f32.mrb[5].mxu1  ;;  %v222_v40 = vsel %vm210_vm3, %v647_v27, 0.0  ;;  %v238_v56 = vsel %vm210_vm3, %v649_v28, 0.0 }
  0xe6   :  { %v218_v32 = vsel %vm210_vm3, %v651_v29, 0.0  ;;  %v657_v33 = vpop.f32.mrb[6].mxu0  ;;  %v659_v34 = vpop.f32.mrb[6].mxu1  ;;  %v234_v51 = vsel %vm210_vm3, %v653_v31, 0.0 }
  0xe7   :  { %v219_v35 = vadd.f32 %v218_v32, %v217_v30  ;;  %v661_v36 = vpop.f32.mrb[7].mxu0  ;;  %v663_v37 = vpop.f32.mrb[7].mxu1  ;;  %v224_v42 = vsel %vm210_vm3, %v657_v33, 0.0  ;;  %v240_v58 = vsel %vm210_vm3, %v659_v34, 0.0 }
  0xe8   :  { %v220_v38 = vsel %vm210_vm3, %v661_v36, 0.0  ;;  %v236_v54 = vsel %vm210_vm3, %v663_v37, 0.0 }
  0xe9   :  { %v221_v39 = vadd.f32 %v220_v38, %v219_v35 }
  0xeb   :  { %v223_v41 = vadd.f32 %v222_v40, %v221_v39 }
  0xed   :  { %v225_v44 = vadd.f32 %v224_v42, %v223_v41 }
  0xef   :  { %v227_v45 = vadd.f32 %v226_v43, %v225_v44 }
  0xf1   :  { %v229_v47 = vadd.f32 %v228_v46, %v227_v45 }
  0xf3   :  { %v231_v49 = vadd.f32 %v230_v48, %v229_v47 }
  0xf5   :  { %v233_v52 = vadd.f32 %v232_v50, %v231_v49 }
  0xf7   :  { %v235_v53 = vadd.f32 %v234_v51, %v233_v52 }
  0xf9   :  { %v237_v55 = vadd.f32 %v236_v54, %v235_v53 }
  0xfb   :  { %v239_v57 = vadd.f32 %v238_v56, %v237_v55 }
  0xfd   :  { %v241_v59 = vadd.f32 %v240_v58, %v239_v57 }
  0xff   :  { %v242_v60 = vrot.slane %v241_v59, 4 }
 0x101   :  { %v243_v61 = vadd.f32 %v242_v60, %v241_v59 }
 0x103   :  { %v244_v62 = vrot.slane %v243_v61, 2 }
 0x105   :  { %v245_v63 = vadd.f32 %v244_v62, %v243_v61 }
 0x107   :  { %v246_v0 = vrot.slane %v245_v63, 1 }
 0x109   :  { %v247_v1 = vadd.f32 %v246_v0, %v245_v63 }
 0x10b   :  { %v687_v2 = vmul.f32 0.0078125, %v247_v1 }
 0x10d   :  { %v250_v3 = vsub.f32 %v627_v15, %v687_v2  ;;  %v251_v4 = vsub.f32 %v635_v19, %v687_v2  ;;  %v252_v5 = vsub.f32 %v623_v13, %v687_v2  ;;  %v253_v6 = vsub.f32 %v631_v17, %v687_v2 }
 0x10e   :  { %v254_v7 = vsub.f32 %v651_v29, %v687_v2  ;;  %v255_v8 = vsub.f32 %v661_v36, %v687_v2  ;;  %v256_v9 = vsub.f32 %v647_v27, %v687_v2  ;;  %v257_v10 = vsub.f32 %v657_v33, %v687_v2 }
 0x10f   :  { %v258_v11 = vsub.f32 %v629_v16, %v687_v2  ;;  %v259_v12 = vsub.f32 %v637_v20, %v687_v2  ;;  %v260_v21 = vsub.f32 %v625_v14, %v687_v2  ;;  %v261_v22 = vsub.f32 %v633_v18, %v687_v2 }
 0x110   :  { %v262_v23 = vsub.f32 %v653_v31, %v687_v2  ;;  %v263_v24 = vsub.f32 %v663_v37, %v687_v2  ;;  %v264_v25 = vsub.f32 %v649_v28, %v687_v2  ;;  %v265_v26 = vsub.f32 %v659_v34, %v687_v2 }
 0x111   :  { %v266_v30 = vmul.f32 %v250_v3, %v250_v3  ;;  %v267_v32 = vmul.f32 %v251_v4, %v251_v4  ;;  %v268_v35 = vmul.f32 %v252_v5, %v252_v5  ;;  %v275_v38 = vmul.f32 %v259_v12, %v259_v12 }
 0x112   :  { %v276_v39 = vmul.f32 %v260_v21, %v260_v21  ;;  %v269_v40 = vmul.f32 %v253_v6, %v253_v6  ;;  %v277_v41 = vmul.f32 %v261_v22, %v261_v22  ;;  %v278_v42 = vmul.f32 %v262_v23, %v262_v23 }
 0x113   :  { %v279_v43 = vmul.f32 %v263_v24, %v263_v24  ;;  %v280_v44 = vmul.f32 %v264_v25, %v264_v25  ;;  %v281_v45 = vmul.f32 %v265_v26, %v265_v26  ;;  %v282_v46 = vsel %vm210_vm3, %v266_v30, 0.0 }
 0x114   :  { %v283_v47 = vsel %vm210_vm3, %v267_v32, 0.0  ;;  %v270_v49 = vmul.f32 %v254_v7, %v254_v7  ;;  %v285_v50 = vsel %vm210_vm3, %v268_v35, 0.0  ;;  %v299_v51 = vsel %vm210_vm3, %v275_v38, 0.0 }
 0x115   :  { %v284_v48 = vadd.f32 %v283_v47, %v282_v46  ;;  %v301_v52 = vsel %vm210_vm3, %v276_v39, 0.0  ;;  %v303_v54 = vsel %vm210_vm3, %v277_v41, 0.0  ;;  %v305_v55 = vsel %vm210_vm3, %v278_v42, 0.0 }
 0x116   :  { %v307_v56 = vsel %vm210_vm3, %v279_v43, 0.0  ;;  %v271_v57 = vmul.f32 %v255_v8, %v255_v8  ;;  %v287_v58 = vsel %vm210_vm3, %v269_v40, 0.0  ;;  %v309_v59 = vsel %vm210_vm3, %v280_v44, 0.0 }
 0x117   :  { %v286_v53 = vadd.f32 %v285_v50, %v284_v48  ;;  %v311_v60 = vsel %vm210_vm3, %v281_v45, 0.0  ;;  %v272_v62 = vmul.f32 %v256_v9, %v256_v9  ;;  %v289_v63 = vsel %vm210_vm3, %v270_v49, 0.0  ;;  %v320_v45 = vld [vmem:[%s826_s2] sm:$0x1] }
 0x118   :  { %v273_v1 = vmul.f32 %v257_v10, %v257_v10  ;;  %v291_v3 = vsel %vm210_vm3, %v271_v57, 0.0  ;;  %v274_v5 = vmul.f32 %v258_v11, %v258_v11  ;;  %v328_v43 = vlaneseq  ;;  %v324_v49 = vld [vmem:[%s827_s3] sm:$0x1] }
 0x119   :  { %v288_v61 = vadd.f32 %v287_v58, %v286_v53  ;;  %v293_v6 = vsel %vm210_vm3, %v272_v62, 0.0 }
 0x11a   :  { %v295_v8 = vsel %vm210_vm3, %v273_v1, 0.0  ;;  %v297_v21 = vsel %vm210_vm3, %v274_v5, 0.0  ;;  %v329_v44 = vshrl.u32 %v328_v43, 7 }
 0x11b   :  { %v290_v0 = vadd.f32 %v289_v63, %v288_v61 }
 0x11c   :  { %v330_v46 = vsub.s32 0, %v329_v44 }
 0x11d   :  { %v292_v4 = vadd.f32 %v291_v3, %v290_v0 }
 0x11f   :  { %v294_v7 = vadd.f32 %v293_v6, %v292_v4 }
 0x121   :  { %v296_v12 = vadd.f32 %v295_v8, %v294_v7 }
 0x123   :  { %v298_v22 = vadd.f32 %v297_v21, %v296_v12 }
 0x125   :  { %v300_v23 = vadd.f32 %v299_v51, %v298_v22 }
 0x127   :  { %v302_v24 = vadd.f32 %v301_v52, %v300_v23 }
 0x129   :  { %v304_v9 = vadd.f32 %v303_v54, %v302_v24 }
 0x12b   :  { %v306_v25 = vadd.f32 %v305_v55, %v304_v9 }
 0x12d   :  { %v308_v26 = vadd.f32 %v307_v56, %v306_v25 }
 0x12f   :  { %v310_v30 = vadd.f32 %v309_v59, %v308_v26 }
 0x131   :  { %v312_v10 = vadd.f32 %v311_v60, %v310_v30 }
 0x133   :  { %v313_v32 = vrot.slane %v312_v10, 4 }
 0x135   :  { %v314_v35 = vadd.f32 %v313_v32, %v312_v10 }
 0x137   :  { %v315_v38 = vrot.slane %v314_v35, 2 }
 0x139   :  { %v316_v11 = vadd.f32 %v315_v38, %v314_v35 }
 0x13b   :  { %v317_v39 = vrot.slane %v316_v11, 1 }
 0x13d   :  { %v318_v40 = vadd.f32 %v317_v39, %v316_v11 }
 0x13f   :  { %v319_v41 = vmul.f32 0.0078125, %v318_v40 }
 0x141   :  { %v321_v42 = vadd.f32 1e-05, %v319_v41 }
 0x143   :  { %560 = vrsqrt.f32 %v321_v42 }
 0x14d   :  { %v561_v47 = vpop.eup %560 }
 0x14e   :  { %v323_v48 = vmul.f32 %v561_v47, %v320_v45 }
 0x150   :  { %v325_v50 = vmul.f32 %v323_v48, %v687_v2  ;;  %v331_v51 = vrot.slane %v323_v48, %v330_v46 }
 0x152   :  { %v326_v52 = vsub.f32 %v324_v49, %v325_v50  ;;  %v333_v53 = vmul.f32 %v331_v51, %v627_v15  ;;  %v334_v54 = vmul.f32 %v331_v51, %v635_v19  ;;  %v335_v55 = vmul.f32 %v623_v13, %v331_v51 }
 0x153   :  { %v336_v56 = vmul.f32 %v631_v17, %v331_v51  ;;  %v337_v57 = vmul.f32 %v331_v51, %v651_v29  ;;  %v338_v58 = vmul.f32 %v331_v51, %v661_v36  ;;  %v339_v59 = vmul.f32 %v647_v27, %v331_v51 }
 0x154   :  { %v340_v60 = vmul.f32 %v657_v33, %v331_v51  ;;  %v341_v2 = vmul.f32 %v331_v51, %v629_v16  ;;  %v342_v61 = vmul.f32 %v331_v51, %v637_v20  ;;  %v343_v15 = vmul.f32 %v625_v14, %v331_v51 }
 0x155   :  { %v344_v19 = vmul.f32 %v633_v18, %v331_v51  ;;  %v345_v13 = vmul.f32 %v331_v51, %v653_v31  ;;  %v346_v17 = vmul.f32 %v331_v51, %v663_v37  ;;  %v347_v29 = vmul.f32 %v649_v28, %v331_v51 }
 0x156   :  { %v348_v36 = vmul.f32 %v659_v34, %v331_v51  ;;  %v353_v62 = vrot.slane %v326_v52, %v330_v46 }
 0x158   :  { %v355_v27 = vadd.f32 %v353_v62, %v333_v53  ;;  %v356_v33 = vadd.f32 %v353_v62, %v334_v54  ;;  %v357_v63 = vadd.f32 %v353_v62, %v335_v55  ;;  %v358_v16 = vadd.f32 %v353_v62, %v336_v56 }
 0x159   :  { %v359_v0 = vadd.f32 %v353_v62, %v337_v57  ;;  %v360_v20 = vadd.f32 %v353_v62, %v338_v58  ;;  %v361_v1 = vadd.f32 %v353_v62, %v339_v59  ;;  %v362_v14 = vadd.f32 %v353_v62, %v340_v60 }
 0x15a   :  { %v363_v3 = vadd.f32 %v353_v62, %v341_v2  ;;  %v364_v18 = vadd.f32 %v353_v62, %v342_v61  ;;  %v365_v4 = vadd.f32 %v353_v62, %v343_v15  ;;  %v366_v31 = vadd.f32 %v353_v62, %v344_v19 }
 0x15b   :  { %v367_v5 = vadd.f32 %v353_v62, %v345_v13  ;;  %v368_v37 = vadd.f32 %v353_v62, %v346_v17  ;;  %v369_v6 = vadd.f32 %v353_v62, %v347_v29  ;;  %v370_v28 = vadd.f32 %v353_v62, %v348_v36 }
 0x15c   :  { %v371_v7 = vmax.f32 %v355_v27, 0.0  ;;  %v372_v34 = vmax.f32 %v356_v33, 0.0  ;;  %v373_v8 = vmax.f32 %v357_v63, 0.0  ;;  %v374_v12 = vmax.f32 %v358_v16, 0.0 }
 0x15d   :  { %v375_v21 = vmax.f32 %v359_v0, 0.0  ;;  %v376_v22 = vmax.f32 %v360_v20, 0.0  ;;  %v377_v23 = vmax.f32 %v361_v1, 0.0  ;;  %v378_v24 = vmax.f32 %v362_v14, 0.0 }
 0x15e   :  { %v379_v9 = vmax.f32 %v363_v3, 0.0  ;;  %v380_v25 = vmax.f32 %v364_v18, 0.0  ;;  %v381_v26 = vmax.f32 %v365_v4, 0.0  ;;  %v382_v30 = vmax.f32 %v366_v31, 0.0 }
 0x15f   :  { %v383_v10 = vmax.f32 %v367_v5, 0.0  ;;  %v384_v32 = vmax.f32 %v368_v37, 0.0  ;;  %v385_v35 = vmax.f32 %v369_v6, 0.0  ;;  %v386_v38 = vmax.f32 %v370_v28, 0.0 }
 0x160   :  { %v505_v11 = vpack.c.bf16 %v371_v7, %v371_v7  ;;  %v506_v39 = vpack.c.bf16 %v372_v34, %v372_v34  ;;  %v507_v40 = vpack.c.bf16 %v373_v8, %v373_v8  ;;  %v508_v41 = vpack.c.bf16 %v374_v12, %v374_v12 }
 0x161   :  { %v509_v42 = vpack.c.bf16 %v375_v21, %v375_v21  ;;  %v510_v43 = vpack.c.bf16 %v376_v22, %v376_v22  ;;  %v511_v44 = vpack.c.bf16 %v377_v23, %v377_v23  ;;  %v512_v45 = vpack.c.bf16 %v378_v24, %v378_v24 }
 0x162   :  { %v513_v46 = vpack.c.bf16 %v379_v9, %v379_v9  ;;  %v514_v47 = vpack.c.bf16 %v380_v25, %v380_v25  ;;  %v515_v48 = vpack.c.bf16 %v381_v26, %v381_v26  ;;  %v516_v49 = vpack.c.bf16 %v382_v30, %v382_v30  ;;  %452 = vst.msk [vmem:[%s828_s4] sm:$0xf] %vm451_vm4, %v505_v11 }
 0x163   :  { %453 = vst.msk [vmem:[%s828_s4 + $0x4] sm:$0xf] %vm451_vm4, %v506_v39  ;;  %454 = vst.msk [vmem:[%s828_s4 + $0x8] sm:$0xf] %vm451_vm4, %v507_v40  ;;  %v517_v50 = vpack.c.bf16 %v383_v10, %v383_v10  ;;  %v518_v51 = vpack.c.bf16 %v384_v32, %v384_v32  ;;  %v519_v52 = vpack.c.bf16 %v385_v35, %v385_v35 }
 0x164   :  { %455 = vst.msk [vmem:[%s828_s4 + $0xc] sm:$0xf] %vm451_vm4, %v508_v41  ;;  %v520_v53 = vpack.c.bf16 %v386_v38, %v386_v38  ;;  %456 = vst.msk [vmem:[%s828_s4 + $0x10] sm:$0xf] %vm451_vm4, %v509_v42 }
 0x165   :  { %457 = vst.msk [vmem:[%s828_s4 + $0x14] sm:$0xf] %vm451_vm4, %v510_v43  ;;  %458 = vst.msk [vmem:[%s828_s4 + $0x18] sm:$0xf] %vm451_vm4, %v511_v44 }
 0x166   :  { %459 = vst.msk [vmem:[%s828_s4 + $0x1c] sm:$0xf] %vm451_vm4, %v512_v45  ;;  %460 = vst.msk [vmem:[%s828_s4 + $0x20] sm:$0xf] %vm451_vm4, %v513_v46 }
 0x167   :  { %461 = vst.msk [vmem:[%s828_s4 + $0x24] sm:$0xf] %vm451_vm4, %v514_v47  ;;  %462 = vst.msk [vmem:[%s828_s4 + $0x28] sm:$0xf] %vm451_vm4, %v515_v48 }
 0x168   :  { %463 = vst.msk [vmem:[%s828_s4 + $0x2c] sm:$0xf] %vm451_vm4, %v516_v49  ;;  %464 = vst.msk [vmem:[%s828_s4 + $0x30] sm:$0xf] %vm451_vm4, %v517_v50 }
 0x169   :  { %465 = vst.msk [vmem:[%s828_s4 + $0x34] sm:$0xf] %vm451_vm4, %v518_v51  ;;  %466 = vst.msk [vmem:[%s828_s4 + $0x38] sm:$0xf] %vm451_vm4, %v519_v52 }
 0x16a   :  { %467 = vst.msk [vmem:[%s828_s4 + $0x3c] sm:$0xf] %vm451_vm4, %v520_v53 }

// kernel: reference_encoder_forward.5
= control target key start
LH: loop header
LB: loop body
LE: loop exit
PB: predicated region body
PF: predicated region fallthrough
CT: control target
= control target key end

     0   :  { %vm52_vm0 = vcmask 293888   ;;  %vm59_vm1 = vcmask 1041408   ;;  %vm112_vm2 = vcmask 31744   ;;  %v158_v47 = vlaneseq  ;;  %s310_s1 = inlined_call_operand.vmem [shape: bf16[36,4], index: 1, kind: input, shape index: {}]   ;;  %s311_s0 = inlined_call_operand.vmem [shape: bf16[32,36], index: 0, kind: input, shape index: {}]   ;;  %s312_s2 = inlined_call_operand.vmem [shape: f32[1,4], index: 2, kind: input, shape index: {}]   ;;  %s313_s3 = inlined_call_operand.vmem [shape: f32[1,4], index: 3, kind: input, shape index: {}]   ;;  %s314_s4 = inlined_call_operand.vmem [shape: bf16[32,4], index: 4, kind: output, shape index: {}]  }
   0x1   :  { %v237_v0 = vld [vmem:[%s310_s1] sm:$0xff]   ;;  %v238_v1 = vld [vmem:[%s310_s1 + $0x8] sm:$0xff]   ;;  %v239_v3 = vld [vmem:[%s310_s1 + $0x10] ss:$0 sps:$4 sm:$0x33]   ;;  %vm197_vm3 = vcmask 27648  }
   0x2   :  { %226 = vmatprep.subr.bf16.mxu0 %v237_v0  ;;  %v240_v2 = vld [vmem:[%s311_s0] sm:$0xff]   ;;  %v61_v4 = vsel %vm59_vm1, %v239_v3, 0  ;;  %v241_v5 = vld [vmem:[%s311_s0 + $0x8] sm:$0xff]   ;;  %v159_v48 = vshrl.u32 %v158_v47, 7 }
   0x3   :  { %227 = vmatpush3.bf16.msra.mxu0 %v237_v0  ;;  %232 = vmatprep.mubr.msk.bf16.mxu0 %vm52_vm0, %v240_v2  ;;  %v150_v49 = vld [vmem:[%s312_s2] sm:$0x1] }
   0x4   :  { %228 = vmatprep.subr.bf16.mxu0 %v238_v1  ;;  %v160_v50 = vsub.s32 0, %v159_v48  ;;  %v154_v53 = vld [vmem:[%s313_s3] sm:$0x1] }
   0x7   :  { %229 = vmatpush3.bf16.msra.mxu0 %v238_v1 }
   0x8   :  { %236 = vmatprep.subr.msk.bf16.mxu0 %vm59_vm1, %v239_v3 }
   0xb   :  { %231 = vmatpush3.bf16.msra.mxu0 %v61_v4 }
   0xe   :  { %233 = vmatmul.mubr.msk.bf16.vlgmr.msra.gmra.mrb[0].mxu0 %vm52_vm0, %v241_v5 }
  0xe1   :  { %v234_v6 = vpop.f32.mrb[0].mxu0 }
  0xe2   :  { %v97_v7 = vpop.f32.mrb[1].mxu0  ;;  %v116_v13 = vsel %vm112_vm2, %v234_v6, 0.0 }
  0xe3   :  { %v235_v8 = vpop.f32.mrb[2].mxu0  ;;  %v113_v10 = vsel %vm112_vm2, %v97_v7, 0.0 }
  0xe4   :  { %v100_v9 = vpop.f32.mrb[3].mxu0  ;;  %v118_v15 = vsel %vm112_vm2, %v235_v8, 0.0 }
  0xe5   :  { %v114_v11 = vsel %vm112_vm2, %v100_v9, 0.0 }
  0xe6   :  { %v115_v12 = vadd.f32 %v114_v11, %v113_v10 }
  0xe8   :  { %v117_v14 = vadd.f32 %v116_v13, %v115_v12 }
  0xea   :  { %v119_v16 = vadd.f32 %v118_v15, %v117_v14 }
  0xec   :  { %v120_v17 = vrot.slane %v119_v16, 4 }
  0xee   :  { %v121_v18 = vadd.f32 %v120_v17, %v119_v16 }
  0xf0   :  { %v122_v19 = vrot.slane %v121_v18, 2 }
  0xf2   :  { %v123_v20 = vadd.f32 %v122_v19, %v121_v18 }
  0xf4   :  { %v124_v21 = vrot.slane %v123_v20, 1 }
  0xf6   :  { %v125_v22 = vadd.f32 %v124_v21, %v123_v20 }
  0xf8   :  { %v127_v23 = vmul.f32 0.03125, %v125_v22 }
  0xfa   :  { %v128_v24 = vsub.f32 %v97_v7, %v127_v23  ;;  %v129_v25 = vsub.f32 %v100_v9, %v127_v23  ;;  %v130_v26 = vsub.f32 %v234_v6, %v127_v23  ;;  %v131_v27 = vsub.f32 %v235_v8, %v127_v23 }
  0xfc   :  { %v132_v28 = vmul.f32 %v128_v24, %v128_v24  ;;  %v133_v29 = vmul.f32 %v129_v25, %v129_v25  ;;  %v134_v30 = vmul.f32 %v130_v26, %v130_v26  ;;  %v135_v31 = vmul.f32 %v131_v27, %v131_v27 }
  0xfe   :  { %v136_v32 = vsel %vm112_vm2, %v132_v28, 0.0  ;;  %v137_v33 = vsel %vm112_vm2, %v133_v29, 0.0  ;;  %v139_v35 = vsel %vm112_vm2, %v134_v30, 0.0  ;;  %v141_v37 = vsel %vm112_vm2, %v135_v31, 0.0 }
  0xff   :  { %v138_v34 = vadd.f32 %v137_v33, %v136_v32 }
 0x101   :  { %v140_v36 = vadd.f32 %v139_v35, %v138_v34 }
 0x103   :  { %v142_v38 = vadd.f32 %v141_v37, %v140_v36 }
 0x105   :  { %v143_v39 = vrot.slane %v142_v38, 4 }
 0x107   :  { %v144_v40 = vadd.f32 %v143_v39, %v142_v38 }
 0x109   :  { %v145_v41 = vrot.slane %v144_v40, 2 }
 0x10b   :  { %v146_v42 = vadd.f32 %v145_v41, %v144_v40 }
 0x10d   :  { %v147_v43 = vrot.slane %v146_v42, 1 }
 0x10f   :  { %v148_v44 = vadd.f32 %v147_v43, %v146_v42 }
 0x111   :  { %v149_v45 = vmul.f32 0.03125, %v148_v44 }
 0x113   :  { %v151_v46 = vadd.f32 1e-05, %v149_v45 }
 0x115   :  { %242 = vrsqrt.f32 %v151_v46 }
 0x11f   :  { %v243_v51 = vpop.eup %242 }
 0x120   :  { %v153_v52 = vmul.f32 %v243_v51, %v150_v49 }
 0x122   :  { %v155_v54 = vmul.f32 %v153_v52, %v127_v23  ;;  %v161_v55 = vrot.slane %v153_v52, %v160_v50 }
 0x124   :  { %v156_v56 = vsub.f32 %v154_v53, %v155_v54  ;;  %v163_v57 = vmul.f32 %v161_v55, %v97_v7  ;;  %v164_v58 = vmul.f32 %v161_v55, %v100_v9  ;;  %v165_v59 = vmul.f32 %v234_v6, %v161_v55 }
 0x125   :  { %v166_v60 = vmul.f32 %v235_v8, %v161_v55 }
 0x126   :  { %v171_v61 = vrot.slane %v156_v56, %v160_v50 }
 0x128   :  { %v173_v62 = vadd.f32 %v171_v61, %v163_v57  ;;  %v174_v63 = vadd.f32 %v171_v61, %v164_v58  ;;  %v175_v0 = vadd.f32 %v171_v61, %v165_v59  ;;  %v176_v1 = vadd.f32 %v171_v61, %v166_v60 }
 0x12a   :  { %v177_v2 = vmax.f32 %v173_v62, 0.0  ;;  %v178_v3 = vmax.f32 %v174_v63, 0.0  ;;  %v179_v4 = vmax.f32 %v175_v0, 0.0  ;;  %v180_v5 = vmax.f32 %v176_v1, 0.0 }
 0x12c   :  { %v217_v10 = vpack.c.bf16 %v177_v2, %v177_v2  ;;  %v218_v11 = vpack.c.bf16 %v178_v3, %v178_v3  ;;  %v219_v12 = vpack.c.bf16 %v179_v4, %v179_v4  ;;  %v220_v13 = vpack.c.bf16 %v180_v5, %v180_v5 }
 0x12e   :  { %198 = vst.msk [vmem:[%s314_s4] sm:$0xf] %vm197_vm3, %v217_v10  ;;  %199 = vst.msk [vmem:[%s314_s4 + $0x4] sm:$0xf] %vm197_vm3, %v218_v11 }
 0x12f   :  { %200 = vst.msk [vmem:[%s314_s4 + $0x8] sm:$0xf] %vm197_vm3, %v219_v12  ;;  %201 = vst.msk [vmem:[%s314_s4 + $0xc] sm:$0xf] %vm197_vm3, %v220_v13 }

// kernel: reference_encoder_forward.6
= control target key start
LH: loop header
LB: loop body
LE: loop exit
PB: predicated region body
PF: predicated region fallthrough
CT: control target
= control target key end

     0   :  { %v161_v0 = vmov 0.0   ;;  %vm162_vm0 = vmmov 0   ;;  %vm43_vm1 = vcmask 1041408   ;;  %vm39_vm2 = vcmask 293888   ;;  %s209_s1 = inlined_call_operand.vmem [shape: bf16[36,8], index: 1, kind: input, shape index: {}]   ;;  %s210_s0 = inlined_call_operand.vmem [shape: bf16[8,36], index: 0, kind: input, shape index: {}]   ;;  %s211_s2 = inlined_call_operand.vmem [shape: f32[1,8], index: 2, kind: input, shape index: {}]   ;;  %s212_s3 = inlined_call_operand.vmem [shape: f32[1,8], index: 3, kind: input, shape index: {}]   ;;  %s213_s4 = inlined_call_operand.vmem [shape: bf16[8,8], index: 4, kind: output, shape index: {}]  }
   0x1   :  { %144 = vmatprep.subr.bf16.mxu0 %v161_v0  ;;  %v156_v1 = vld [vmem:[%s209_s1] sm:$0xff]   ;;  %150 = vmatprep.mubr.msk.bf16.mxu0 %vm162_vm0, %v161_v0  ;;  %v157_v2 = vld [vmem:[%s209_s1 + $0x8] sm:$0xff]   ;;  %v158_v3 = vld [vmem:[%s209_s1 + $0x10] ss:$0 sps:$4 sm:$0x33]   ;;  %vm87_vm3 = vcmask 64512   ;;  %v115_v29 = vlaneseq }
   0x2   :  { %145 = vmatpush3.bf16.msra.mxu0 %v156_v1  ;;  %v45_v4 = vsel %vm43_vm1, %v158_v3, 0  ;;  %v18_v5 = vld [vmem:[%s210_s0] sm:$0xf]  ;;  %vm130_vm4 = vcmask 60416  }
   0x3   :  { %146 = vmatprep.subr.bf16.mxu0 %v161_v0  ;;  %v116_v30 = vshrl.u32 %v115_v29, 7  ;;  %v107_v31 = vld [vmem:[%s211_s2] sm:$0x1] }
   0x4   :  { %v111_v35 = vld [vmem:[%s212_s3] sm:$0x1] }
   0x5   :  { %v117_v32 = vsub.s32 0, %v116_v30 }
   0x6   :  { %147 = vmatpush3.bf16.msra.mxu0 %v157_v2 }
   0x7   :  { %148 = vmatprep.subr.bf16.mxu0 %v161_v0 }
   0xa   :  { %149 = vmatpush3.bf16.msra.mxu0 %v45_v4 }
   0xd   :  { %151 = vmatmul.mubr.msk.bf16.vlgmr.msra.gmra.mrb[0].mxu0 %vm39_vm2, %v18_v5 }
  0xe0   :  { %v81_v6 = vpop.f32.mrb[0].mxu0 }
  0xe1   :  { %v88_v7 = vsel %vm87_vm3, %v81_v6, 0.0  ;;  %v152_v8 = vpop.f32.mrb[1].mxu0 }
  0xe2   :  { %v89_v9 = vrot.slane %v88_v7, 4  ;;  %v84_v10 = vpop.f32.mrb[2].mxu0 }
  0xe3   :  { %v153_v11 = vpop.f32.mrb[3].mxu0 }
  0xe4   :  { %v90_v12 = vadd.f32 %v89_v9, %v88_v7 }
  0xe6   :  { %v91_v13 = vrot.slane %v90_v12, 2 }
  0xe8   :  { %v92_v14 = vadd.f32 %v91_v13, %v90_v12 }
  0xea   :  { %v93_v15 = vrot.slane %v92_v14, 1 }
  0xec   :  { %v94_v16 = vadd.f32 %v93_v15, %v92_v14 }
  0xee   :  { %v96_v17 = vmul.f32 0.125, %v94_v16 }
  0xf0   :  { %v97_v18 = vsub.f32 %v81_v6, %v96_v17 }
  0xf2   :  { %v98_v19 = vmul.f32 %v97_v18, %v97_v18 }
  0xf4   :  { %v99_v20 = vsel %vm87_vm3, %v98_v19, 0.0 }
  0xf5   :  { %v100_v21 = vrot.slane %v99_v20, 4 }
  0xf7   :  { %v101_v22 = vadd.f32 %v100_v21, %v99_v20 }
  0xf9   :  { %v102_v23 = vrot.slane %v101_v22, 2 }
  0xfb   :  { %v103_v24 = vadd.f32 %v102_v23, %v101_v22 }
  0xfd   :  { %v104_v25 = vrot.slane %v103_v24, 1 }
  0xff   :  { %v105_v26 = vadd.f32 %v104_v25, %v103_v24 }
 0x101   :  { %v106_v27 = vmul.f32 0.125, %v105_v26 }
 0x103   :  { %v108_v28 = vadd.f32 1e-05, %v106_v27 }
 0x105   :  { %159 = vrsqrt.f32 %v108_v28 }
 0x10f   :  { %v160_v33 = vpop.eup %159 }
 0x110   :  { %v110_v34 = vmul.f32 %v160_v33, %v107_v31 }
 0x112   :  { %v112_v36 = vmul.f32 %v110_v34, %v96_v17  ;;  %v118_v37 = vrot.slane %v110_v34, %v117_v32 }
 0x114   :  { %v113_v38 = vsub.f32 %v111_v35, %v112_v36  ;;  %v120_v39 = vmul.f32 %v118_v37, %v81_v6 }
 0x116   :  { %v125_v40 = vrot.slane %v113_v38, %v117_v32 }
 0x118   :  { %v127_v41 = vadd.f32 %v125_v40, %v120_v39 }
 0x11a   :  { %v128_v42 = vmax.f32 %v127_v41, 0.0 }
 0x11c   :  { %v129_v43 = vpack.c.bf16 %v128_v42, %v128_v42 }
 0x11e   :  { %131 = vst.msk [vmem:[%s213_s4] sm:$0xf] %vm130_vm4, %v129_v43 }

// kernel: reference_encoder_forward.7
= control target key start
LH: loop header
LB: loop body
LE: loop exit
PB: predicated region body
PF: predicated region fallthrough
CT: control target
= control target key end

     0   :  { %v1061_v2 = vmov 0   ;;  %v1062_v5 = vmov 0.0   ;;  %vm104_vm0 = vcmask 130048   ;;  %vm1063_vm1 = vmmov 0   ;;  %s1296_s0 = inlined_call_operand.vmem [shape: bf16[2,2,16], index: 0, kind: input, shape index: {}]   ;;  %s1297_s1 = inlined_call_operand.vmem [shape: bf16[16,384], index: 1, kind: input, shape index: {}]   ;;  %s1298_s2 = inlined_call_operand.vmem [shape: f32[1,384], index: 2, kind: input, shape index: {}]   ;;  %s1299_s3 = inlined_call_operand.vmem [shape: bf16[128,384], index: 3, kind: input, shape index: {}]   ;;  %s1300_s4 = inlined_call_operand.vmem [shape: f32[1,384], index: 4, kind: input, shape index: {}]   ;;  %s1301_s5 = inlined_call_operand.hbm [shape: f32[2,128], index: 5, kind: output, shape index: {}]  }
   0x1   :  { %v1098_v0 = vld [vmem:[%s1297_s1 + $0x4] ss:$12 sps:$4 sm:$0xff]   ;;  %v1103_v1 = vld [vmem:[%s1297_s1] ss:$12 sps:$4 sm:$0xff]   ;;  %140 = vmatprep.mubr.bf16.mxu0 %v1061_v2  ;;  %909 = vmatprep.subr.bf16.mxu1 %v1062_v5  ;;  %26 = vst [vmem:[#allocation2] sm:$0x3] %v1062_v5 }
   0x2   :  { %108 = vmatprep.subr.bf16.mxu0 %v1098_v0  ;;  %v1110_v3 = vld [vmem:[%s1299_s3] ss:$12 sps:$4 sm:$0xff]   ;;  %v1115_v4 = vld [vmem:[%s1299_s3 + $0x4] ss:$12 sps:$4 sm:$0xff]   ;;  %911 = vmatprep.mubr.msk.bf16.mxu1 %vm1063_vm1, %v1062_v5  ;;  %v1129_v7 = vld [vmem:[%s1299_s3 + $0x1c] ss:$12 sps:$4 sm:$0xff]  }
   0x3   :  { %109 = vmatpush1.bf16.msra.mxu0 %v1103_v1  ;;  %v71_v6 = vld [vmem:[%s1296_s0] sm:$0x1]  ;;  %v1136_v8 = vld [vmem:[%s1299_s3 + $0x18] ss:$12 sps:$4 sm:$0xff]   ;;  %v999_v10 = vld [vmem:[%s1297_s1 + $0x8] ss:$12 sps:$4 sm:$0xff]  }
   0x4   :  { %334 = vmatprep.subr.bf16.mxu0 %v1115_v4  ;;  %v1143_v9 = vld [vmem:[%s1299_s3 + $0x34] ss:$12 sps:$4 sm:$0xff]   ;;  %v1152_v11 = vld [vmem:[%s1299_s3 + $0x30] ss:$12 sps:$4 sm:$0xff]   ;;  %v1157_v12 = vld [vmem:[%s1299_s3 + $0x4c] ss:$12 sps:$4 sm:$0xff]   ;;  %910 = vmatpush3.bf16.msra.mxu1 %v999_v10 }
   0x5   :  { %915 = vmatprep.subr.bf16.mxu1 %v1062_v5  ;;  %v1006_v13 = vld [vmem:[%s1299_s3 + $0x8] ss:$12 sps:$4 sm:$0xff]   ;;  %v1010_v15 = vld [vmem:[%s1299_s3 + $0x20] ss:$12 sps:$4 sm:$0xff]   ;;  %v1178_v16 = vld [vmem:[%s1299_s3 + $0x64] ss:$12 sps:$4 sm:$0xff]  }
   0x6   :  { %827 = vmatmul.mubr.msk.bf16.vlgmr.msra.gmra.mrb[0].mxu0 %vm104_vm0, %v71_v6  ;;  %v1169_v14 = vld [vmem:[%s1299_s3 + $0x48] ss:$12 sps:$4 sm:$0xff]   ;;  %v1186_v17 = vld [vmem:[%s1299_s3 + $0x60] ss:$12 sps:$4 sm:$0xff]   ;;  %v1011_v18 = vld [vmem:[%s1299_s3 + $0x38] ss:$12 sps:$4 sm:$0xff]  }
   0x7   :  { %335 = vmatpush1.bf16.msra.mxu0 %v1110_v3  ;;  %366 = vmatprep.mubr.bf16.mxu0 %v1061_v2  ;;  %v1196_v19 = vld [vmem:[%s1299_s3 + $0x7c] ss:$12 sps:$4 sm:$0xff]  }
   0x8   :  { %336 = vmatprep.subr.bf16.mxu0 %v1129_v7  ;;  %912 = vmatmul.mubr.msk.bf16.vlgmr.msra.gmra.mrb[0].mxu1 %vm104_vm0, %v71_v6 }
   0x9   :  { %916 = vmatpush3.bf16.msra.mxu1 %v1006_v13  ;;  %931 = vmatprep.mubr.msk.bf16.mxu1 %vm1063_vm1, %v1062_v5 }
   0xa   :  { %917 = vmatprep.subr.bf16.mxu1 %v1062_v5 }
   0xb   :  { %337 = vmatpush1.bf16.msra.mxu0 %v1136_v8 }
   0xc   :  { %338 = vmatprep.subr.bf16.mxu0 %v1143_v9 }
   0xd   :  { %918 = vmatpush3.bf16.msra.mxu1 %v1010_v15 }
   0xe   :  { %919 = vmatprep.subr.bf16.mxu1 %v1062_v5 }
   0xf   :  { %339 = vmatpush1.bf16.msra.mxu0 %v1152_v11 }
  0x10   :  { %340 = vmatprep.subr.bf16.mxu0 %v1157_v12 }
  0x13   :  { %341 = vmatpush1.bf16.msra.mxu0 %v1169_v14 }
  0x14   :  { %342 = vmatprep.subr.bf16.mxu0 %v1178_v16 }
  0x15   :  { %10 = vsyncpa [#allocation3], 0  ;;  %v1203_v20 = vld [vmem:[%s1299_s3 + $0x78] ss:$12 sps:$4 sm:$0xff]   ;;  %920 = vmatpush3.bf16.msra.mxu1 %v1011_v18  ;;  %v1012_v21 = vld [vmem:[%s1299_s3 + $0x50] ss:$12 sps:$4 sm:$0xff]   ;;  %v73_v37 = vlaneseq }
  0x16   :  { %v1005_v22 = vld [vmem:[%s1299_s3 + $0x94] ss:$12 sps:$4 sm:$0xff]   ;;  %921 = vmatprep.subr.bf16.mxu1 %v1062_v5  ;;  %v1003_v23 = vld [vmem:[%s1299_s3 + $0x90] ss:$12 sps:$4 sm:$0xff]   ;;  %v1009_v25 = vld [vmem:[%s1299_s3 + $0xac] ss:$12 sps:$4 sm:$0xff]  }
  0x17   :  { %343 = vmatpush1.bf16.msra.mxu0 %v1186_v17  ;;  %v1013_v24 = vld [vmem:[%s1299_s3 + $0x68] ss:$12 sps:$4 sm:$0xff]   ;;  %v1227_v27 = vld [vmem:[#allocation2] sm:$0x3]  ;;  %v1015_v30 = vld [vmem:[%s1299_s3 + $0x98] ss:$12 sps:$4 sm:$0xff]  }
  0x18   :  { %344 = vmatprep.subr.bf16.mxu0 %v1196_v19  ;;  %v1007_v26 = vld [vmem:[%s1299_s3 + $0xa8] ss:$12 sps:$4 sm:$0xff]   ;;  %v1014_v28 = vld [vmem:[%s1299_s3 + $0x80] ss:$12 sps:$4 sm:$0xff]   ;;  %v189_v29 = vpack.c.bf16 %v1227_v27, %v1227_v27  ;;  %v1016_v31 = vld [vmem:[%s1299_s3 + $0xb0] ss:$12 sps:$4 sm:$0xff]  }
  0x19   :  { %922 = vmatpush3.bf16.msra.mxu1 %v1012_v21  ;;  %v855_v32 = vld [vmem:[%s1296_s0 + $0x1] sm:$0x1]  ;;  %v74_v38 = vshrl.u32 %v73_v37, 7 }
  0x1a   :  { %923 = vmatprep.subr.bf16.mxu1 %v1062_v5  ;;  %v64_v40 = vld [vmem:[%s1300_s4] sm:$0x7] }
  0x1b   :  { %345 = vmatpush1.bf16.msra.mxu0 %v1203_v20  ;;  %v75_v39 = vsub.s32 0, %v74_v38  ;;  %v31_v41 = vld [vmem:[%s1298_s2] sm:$0x7]  ;;  %v79_v42 = vsub.s32 1, %v74_v38  ;;  %v83_v63 = vsub.s32 2, %v74_v38  ;;  %s1064_s2 = smov [#allocation2]  }
  0x1c   :  { %346 = vmatprep.subr.bf16.mxu0 %v1005_v22  ;;  %s816_s4 = sshll.u32 %s1064_s2, 4  ;;  %s817_s4 = int_to_ptr.vmem [resolvable:$true] %s816_s4 }
  0x1d   :  { %924 = vmatpush3.bf16.msra.mxu1 %v1013_v24  ;;  %v76_v43 = vrot.slane %v31_v41, %v75_v39  ;;  %v194_v44 = vrot.slane %v64_v40, %v75_v39  ;;  %v80_v45 = vrot.slane %v31_v41, %v79_v42  ;;  %v198_v46 = vrot.slane %v64_v40, %v79_v42  ;;  %s1037_s26 = scalar_lea.vmem %s817_s4, 32  ;;  %p1042_p1 = scmp.lt.s32.totalorder %s817_s4, %s817_s4 }
  0x1e   :  { %925 = vmatprep.subr.bf16.mxu1 %v1062_v5  ;;  %p1038_p0 = scmp.ne.s32.totalorder %s817_s4, %s1037_s26  ;;  %p1043_p2 = scmp.lt.s32.totalorder %s1037_s26, %s1037_s26 }
  0x1f   :  { %347 = vmatpush1.bf16.msra.mxu0 %v1003_v23  ;;  %v961_v47 = vadd.f32 %v194_v44, %v76_v43  ;;  %v963_v49 = vadd.f32 %v198_v46, %v80_v45 }
  0x20   :  { %348 = vmatprep.subr.bf16.mxu0 %v1009_v25  ;;  %p1044_p3 = por %p1043_p2, %p1042_p1 }
  0x21   :  { %926 = vmatpush3.bf16.msra.mxu1 %v1014_v28 }
  0x22   :  { %927 = vmatprep.subr.bf16.mxu1 %v1062_v5  ;;  %p1045_p4 = pnand %p1044_p3, %p1038_p0 }
  0x23   :  { %349 = vmatpush1.bf16.msra.mxu0 %v1007_v26 }
  0x24   :  { %481 = vmatprep.subr.bf16.mxu0 %v1098_v0  ;;  %v202_v0 = vrot.slane %v64_v40, %v83_v63 }
  0x25   :  { %928 = vmatpush3.bf16.msra.mxu1 %v1015_v30 }
  0x26   :  { %367 = vmatmul.mubr.bf16.vlgmr.msra.gmra.mrb[0].mxu0 %v189_v29  ;;  %929 = vmatprep.subr.bf16.mxu1 %v1062_v5 }
  0x27   :  { %482 = vmatpush1.bf16.msra.mxu0 %v1103_v1  ;;  %513 = vmatprep.mubr.bf16.mxu0 %v1061_v2 }
  0x28   :  { %707 = vmatprep.subr.bf16.mxu0 %v1115_v4 }
  0x29   :  { %930 = vmatpush3.bf16.msra.mxu1 %v1016_v31 }
  0x2a   :  { %935 = vmatprep.subr.bf16.mxu1 %v1062_v5 }
  0x2c   :  { %932 = vmatmul.mubr.bf16.vlgmr.msra.gmra.mrb[4].mxu1 %v189_v29 }
  0x2d   :  { %936 = vmatpush3.bf16.msra.mxu1 %v999_v10  ;;  %937 = vmatprep.mubr.msk.bf16.mxu1 %vm1063_vm1, %v1062_v5 }
  0x2e   :  { %941 = vmatprep.subr.bf16.mxu1 %v1062_v5  ;;  %859 = vmatmul.mubr.msk.bf16.vlgmr.msra.gmra.mrb[4].mxu0 %vm104_vm0, %v855_v32 }
  0x2f   :  { %708 = vmatpush1.bf16.msra.mxu0 %v1110_v3  ;;  %739 = vmatprep.mubr.bf16.mxu0 %v1061_v2  ;;  %v84_v2 = vrot.slane %v31_v41, %v83_v63 }
  0x30   :  { %709 = vmatprep.subr.bf16.mxu0 %v1129_v7 }
  0x33   :  { %710 = vmatpush1.bf16.msra.mxu0 %v1136_v8 }
  0x34   :  { %938 = vmatmul.mubr.msk.bf16.vlgmr.msra.gmra.mrb[8].mxu1 %vm104_vm0, %v855_v32  ;;  %711 = vmatprep.subr.bf16.mxu0 %v1143_v9 }
  0x35   :  { %942 = vmatpush3.bf16.msra.mxu1 %v1006_v13  ;;  %957 = vmatprep.mubr.msk.bf16.mxu1 %vm1063_vm1, %v1062_v5 }
  0x36   :  { %943 = vmatprep.subr.bf16.mxu1 %v1062_v5 }
  0x37   :  { %712 = vmatpush1.bf16.msra.mxu0 %v1152_v11 }
  0x38   :  { %713 = vmatprep.subr.bf16.mxu0 %v1157_v12 }
  0x39   :  { %944 = vmatpush3.bf16.msra.mxu1 %v1010_v15 }
  0x3a   :  { %945 = vmatprep.subr.bf16.mxu1 %v1062_v5 }
  0x3b   :  { %714 = vmatpush1.bf16.msra.mxu0 %v1169_v14 }
  0x3c   :  { %715 = vmatprep.subr.bf16.mxu0 %v1178_v16 }
  0x3d   :  { %946 = vmatpush3.bf16.msra.mxu1 %v1011_v18 }
  0x3e   :  { %947 = vmatprep.subr.bf16.mxu1 %v1062_v5 }
  0x3f   :  { %716 = vmatpush1.bf16.msra.mxu0 %v1186_v17 }
  0x40   :  { %717 = vmatprep.subr.bf16.mxu0 %v1196_v19 }
  0x41   :  { %948 = vmatpush3.bf16.msra.mxu1 %v1012_v21 }
  0x42   :  { %949 = vmatprep.subr.bf16.mxu1 %v1062_v5 }
  0x43   :  { %718 = vmatpush1.bf16.msra.mxu0 %v1203_v20 }
  0x44   :  { %719 = vmatprep.subr.bf16.mxu0 %v1005_v22 }
  0x45   :  { %950 = vmatpush3.bf16.msra.mxu1 %v1013_v24 }
  0x46   :  { %951 = vmatprep.subr.bf16.mxu1 %v1062_v5 }
  0x47   :  { %720 = vmatpush1.bf16.msra.mxu0 %v1003_v23 }
  0x48   :  { %721 = vmatprep.subr.bf16.mxu0 %v1009_v25 }
  0x49   :  { %952 = vmatpush3.bf16.msra.mxu1 %v1014_v28 }
  0x4a   :  { %953 = vmatprep.subr.bf16.mxu1 %v1062_v5 }
  0x4b   :  { %722 = vmatpush1.bf16.msra.mxu0 %v1007_v26 }
  0x4d   :  { %954 = vmatpush3.bf16.msra.mxu1 %v1015_v30 }
  0x4e   :  { %955 = vmatprep.subr.bf16.mxu1 %v1062_v5 }
  0x51   :  { %956 = vmatpush3.bf16.msra.mxu1 %v1016_v31 }
  0xdb   :  { %v183_v33 = vpop.f32.mrb[0].mxu1 }
  0xdc   :  { %v913_v34 = vpop.f32.mrb[1].mxu1  ;;  %v184_v6 = vadd.f32 %v183_v33, %v84_v2 }
  0xdd   :  { %v186_v35 = vpop.f32.mrb[2].mxu1 }
  0xde   :  { %v914_v36 = vpop.f32.mrb[3].mxu1 }
  0xf9   :  { %v368_v48 = vpop.f32.mrb[0].mxu0 }
  0xfa   :  { %v962_v50 = vadd.f32 %v961_v47, %v368_v48  ;;  %v370_v51 = vpop.f32.mrb[1].mxu0 }
  0xfb   :  { %v372_v52 = vpop.f32.mrb[2].mxu0  ;;  %v964_v55 = vadd.f32 %v963_v49, %v370_v51 }
  0xfc   :  { %v853_v53 = vmul.f32 -1.442695, %v962_v50  ;;  %v373_v54 = vpop.f32.mrb[3].mxu0 }
  0xfd   :  { %v854_v56 = vmul.f32 -1.442695, %v964_v55 }
  0xfe   :  { %1017 = vpow2.f32 %v853_v53 }
  0xff   :  { %v409_v57 = vpop.f32.mrb[4].mxu1  ;;  %1019 = vpow2.f32 %v854_v56 }
 0x100   :  { %v933_v58 = vpop.f32.mrb[5].mxu1  ;;  %v410_v4 = vadd.f32 %v409_v57, %v202_v0 }
 0x101   :  { %v412_v59 = vpop.f32.mrb[6].mxu1 }
 0x102   :  { %v934_v60 = vpop.f32.mrb[7].mxu1 }
 0x107   :  { %v556_v17 = vpop.f32.mrb[8].mxu1 }
 0x108   :  { %v1018_v61 = vpop.eup %1017  ;;  %v939_v18 = vpop.f32.mrb[9].mxu1  ;;  %v557_v39 = vadd.f32 %v556_v17, %v84_v2 }
 0x109   :  { %v419_v62 = vadd.f32 1.0, %v1018_v61  ;;  %v1020_v1 = vpop.eup %1019  ;;  %v559_v19 = vpop.f32.mrb[10].mxu1 }
 0x10a   :  { %v426_v3 = vadd.f32 1.0, %v1020_v1  ;;  %v940_v20 = vpop.f32.mrb[11].mxu1 }
 0x10b   :  { %1021 = vrcp.f32 %v419_v62 }
 0x10c   :  { %1023 = vrcp.f32 %v426_v3 }
 0x115   :  { %v1022_v5 = vpop.eup %1021 }
 0x116   :  { %v429_v7 = vmul.f32 %v1022_v5, %v410_v4  ;;  %v1024_v9 = vpop.eup %1023 }
 0x117   :  { %v432_v10 = vsub.f32 1.0, %v1024_v9  ;;  %v434_v12 = vmul.f32 %v1024_v9, %v1227_v27 }
 0x118   :  { %v430_v8 = vadd.f32 %v429_v7, %v184_v6 }
 0x11a   :  { %1025 = vtanh.f32 %v430_v8 }
 0x124   :  { %v1026_v11 = vpop.eup %1025 }
 0x125   :  { %v433_v13 = vmul.f32 %v1026_v11, %v432_v10 }
 0x127   :  { %v435_v14 = vadd.f32 %v434_v12, %v433_v13 }
 0x129   :  { %436 = vst [vmem:[#allocation2] sm:$0x3] %v435_v14 }
 0x130   :  { %v442_v15 = vld [vmem:[#allocation2] sm:$0x3] }
 0x131   :  { %v562_v16 = vpack.c.bf16 %v442_v15, %v442_v15 }
 0x133   :  { %740 = vmatmul.mubr.bf16.vlgmr.msra.gmra.mrb[4].mxu0 %v562_v16  ;;  %958 = vmatmul.mubr.bf16.vlgmr.msra.gmra.mrb[12].mxu1 %v562_v16 }
 0x206   :  { %v741_v21 = vpop.f32.mrb[4].mxu0  ;;  %v782_v22 = vpop.f32.mrb[12].mxu1 }
 0x207   :  { %v966_v23 = vadd.f32 %v961_v47, %v741_v21  ;;  %v743_v24 = vpop.f32.mrb[5].mxu0  ;;  %v959_v25 = vpop.f32.mrb[13].mxu1  ;;  %v783_v37 = vadd.f32 %v782_v22, %v202_v0 }
 0x208   :  { %v745_v26 = vpop.f32.mrb[6].mxu0  ;;  %v785_v28 = vpop.f32.mrb[14].mxu1  ;;  %v968_v31 = vadd.f32 %v963_v49, %v743_v24 }
 0x209   :  { %v885_v29 = vmul.f32 -1.442695, %v966_v23  ;;  %v746_v27 = vpop.f32.mrb[7].mxu0  ;;  %v960_v30 = vpop.f32.mrb[15].mxu1 }
 0x20a   :  { %v886_v32 = vmul.f32 -1.442695, %v968_v31 }
 0x20b   :  { %1027 = vpow2.f32 %v885_v29 }
 0x20c   :  { %1029 = vpow2.f32 %v886_v32 }
 0x215   :  { %v1028_v33 = vpop.eup %1027 }
 0x216   :  { %v792_v34 = vadd.f32 1.0, %v1028_v33  ;;  %v1030_v35 = vpop.eup %1029 }
 0x217   :  { %v799_v36 = vadd.f32 1.0, %v1030_v35 }
 0x218   :  { %1031 = vrcp.f32 %v792_v34 }
 0x219   :  { %1033 = vrcp.f32 %v799_v36 }
 0x222   :  { %v1032_v38 = vpop.eup %1031 }
 0x223   :  { %v802_v40 = vmul.f32 %v1032_v38, %v783_v37  ;;  %v1034_v42 = vpop.eup %1033 }
 0x224   :  { %v805_v43 = vsub.f32 1.0, %v1034_v42  ;;  %v807_v46 = vmul.f32 %v1034_v42, %v442_v15 }
 0x225   :  { %v803_v41 = vadd.f32 %v802_v40, %v557_v39 }
 0x227   :  { %1035 = vtanh.f32 %v803_v41 }
 0x231   :  { %v1036_v44 = vpop.eup %1035 }
 0x232   :  { %v806_v45 = vmul.f32 %v1036_v44, %v805_v43 }
 0x234   :  { %v808_v47 = vadd.f32 %v807_v46, %v806_v45 }
 0x236   :  { %809 = vst [vmem:[#allocation2] sm:$0x3] %v808_v47 }
 0x237   :  { %1048 = shalt.err (!%p1045_p4)
}
 0x238   :  { %s1049_s29 = scalar_lea.hbm %s1301_s5, 32 }
 0x239   :  { %p1050_p5 = scmp.ne.s32.totalorder %s1301_s5, %s1049_s29  ;;  %p1053_p6 = scmp.lt.u32.totalorder %s1049_s29, %s1301_s5 }
 0x23b   :  { %p1055_p7 = pnand %p1053_p6, %p1050_p5 }
 0x23d   :  { %1058 = shalt.err (!%p1055_p7)
}
 0x23e   :  { %819 = dma.vmem_to_hbm [thread:$0]  %s817_s4, 32, %s1301_s5, [#allocation3]  }
 0x23f   :  { %1059 = dma.done.wait [#allocation3], 32  }
 0x240   :  { %1060 = vsyncadd [#allocation3], 4294967264 }
 0x241   :  { %823 = vsyncpa [#allocation3], 1 }

</bundles_post_ra>
